<compile_context>
chip_gen: v7x
topology: tpu7x:2x2x1
jax: 0.10.0
libtpu: 0.0.40
codegen_flags: <defaults>
</compile_context>

<pallas_src>
import functools

import jax
import jax.numpy as jnp
from jax.experimental import pallas as pl
from jax.experimental.pallas import tpu as pltpu


def _mlp_higgs_kernel(x_ref, w1_ref, b1_ref, w2_ref, b2_ref, w3t_ref, b3_ref,
                      o_ref, *, bf16_epilogue):
    # In-kernel bf16 cast of the x tile: replaces a whole-array wrapper pre-pass
    # over x (a full serialized HBM read+write) with a few vregs of VPU work.
    x_bf = x_ref[...].astype(jnp.bfloat16)

    # Layer 1: (T, D_in) @ (D_in, H) on the MXU, bf16 operands, f32 accumulation.
    h1 = jnp.dot(x_bf, w1_ref[...], preferred_element_type=jnp.float32)

    if bf16_epilogue:
        # v6e / v7x: bf16 VALU exists -> bias-add + ReLU in bf16 halves the
        # epilogue VALU ops and the VMEM bytes of the (T, H) intermediates.
        h1 = jnp.maximum(h1.astype(jnp.bfloat16) + b1_ref[...], 0.0)
        h2 = jnp.dot(h1, w2_ref[...], preferred_element_type=jnp.float32)
        h2 = jnp.maximum(h2.astype(jnp.bfloat16) + b2_ref[...], 0.0)
    else:
        # v5e: no bf16 VALU -> keep the epilogue in f32.
        h1 = jnp.maximum(h1 + b1_ref[...], 0.0)
        h2 = jnp.dot(h1.astype(jnp.bfloat16), w2_ref[...],
                     preferred_element_type=jnp.float32)
        h2 = jnp.maximum(h2 + b2_ref[...], 0.0)

    # Layer 3 head (output_dim == 1): VPU multiply + XLU lane reduction in f32,
    # keeping the MXU free for the two wide matmuls.
    # TODO(synk): profile-gated follow-ups — MXU (T,H)@(H,1) head on v6e/v7x and a
    # lane-dense (1, T) out block if the vst slot ever shows up as the binding unit.
    prod = h2 * w3t_ref[...]                           # promotes to f32
    out = jnp.sum(prod, axis=-1, keepdims=True) + b3_ref[...]
    o_ref[...] = out.astype(o_ref.dtype)


def _round_up(n, m):
    return ((n + m - 1) // m) * m


def _device_kind():
    try:
        return jax.devices()[0].device_kind.lower()
    except Exception:  # pragma: no cover - defensive; never expected on TPU
        return ""


def _pick_tile(B, batch_tile, num_tc):
    # Never allocate a block (much) larger than the batch itself.
    tile = min(batch_tile, max(256, _round_up(B, 256)))
    if num_tc > 1 and B > 256:
        # Guarantee >= num_tc grid steps so ("parallel",) can shard row tiles
        # across the v7x TensorCores instead of leaving one idle.
        per_core = max(256, _round_up(-(-B // num_tc), 256))
        tile = min(tile, per_core)
    return tile


def mlp_higgs_forward(x, params, *, batch_tile=2048, bf16_epilogue=None):
    """Fused MLP_Higgs forward.  x: (B, input_dim) float32.

    batch_tile: rows per grid step; sweep 1024..4096 (multiple of 256) at large
    batch.  It is clamped to 2048 on v7x (tighter 64 MiB physical VMEM, 2 TCs) and
    further clamped so the grid has at least one step per TensorCore.
    bf16_epilogue: None = auto (bf16 bias+ReLU on v6e/v7x, f32 on v5e).
    """
    w1, b1, w2, b2, w3, b3 = params
    B, D_in = x.shape
    H = w1.shape[1]
    D_out = w3.shape[1]
    assert D_out == 1, "kernel is specialised for the Higgs head (output_dim == 1)"
    assert batch_tile % 8 == 0, "batch_tile must be a multiple of 8 (use 256k)"

    kind = _device_kind()
    if bf16_epilogue is None:
        bf16_epilogue = ("v6" in kind) or ("v7" in kind)
    num_tc = 2 if "v7" in kind else 1
    if "v7" in kind:
        batch_tile = min(batch_tile, 2048)

    tile = _pick_tile(B, batch_tile, num_tc)
    # Ragged last tile handled by Pallas edge clipping -> no jnp.pad HBM pass.
    grid = (pl.cdiv(B, tile),)

    # Weights/biases cast once per call (tiny arrays); x stays f32 and is cast
    # in-kernel, so there is no extra serialized HBM pass over the (B, D_in) input.
    w1_bf = w1.astype(jnp.bfloat16)
    w2_bf = w2.astype(jnp.bfloat16)
    eps_dt = jnp.bfloat16 if bf16_epilogue else jnp.float32
    b1_k = b1.astype(eps_dt)
    b2_k = b2.astype(eps_dt)
    w3t = w3.astype(jnp.float32).T                     # (1, H) row for the VPU head

    def resident(shape):
        # Whole-array block with a constant index_map -> stays resident in VMEM.
        return pl.BlockSpec(shape, lambda i: tuple(0 for _ in shape))

    kernel = functools.partial(_mlp_higgs_kernel, bf16_epilogue=bf16_epilogue)

    out = pl.pallas_call(
        kernel,
        out_shape=jax.ShapeDtypeStruct((B, D_out), jnp.float32),
        grid_spec=pltpu.PrefetchScalarGridSpec(
            num_scalar_prefetch=0,
            grid=grid,
            in_specs=[
                pl.BlockSpec((tile, D_in), lambda i: (i, 0)),   # x tile (f32)
                resident((D_in, H)),      # W1 (bf16)
                resident((1, H)),         # b1
                resident((H, H)),         # W2 (bf16)
                resident((1, H)),         # b2
                resident((1, H)),         # W3^T row (f32)
                resident((1, D_out)),     # b3 (f32)
            ],
            out_specs=pl.BlockSpec((tile, D_out), lambda i: (i, 0)),
        ),
        compiler_params=pltpu.CompilerParams(
            dimension_semantics=("parallel",)),
    )(x, w1_bf, b1_k, w2_bf, b2_k, w3t, b3)

    return out


def init_params(key, input_dim=24, hidden_dim=256, output_dim=1):
    """PyTorch-Linear-style init (U[-1/sqrt(fan_in), 1/sqrt(fan_in)]).
    Weights stored as (in_features, out_features)."""
    ks = jax.random.split(key, 6)

    def lin(kw, kb, fan_in, fan_out):
        bound = 1.0 / jnp.sqrt(jnp.float32(fan_in))
        w = jax.random.uniform(kw, (fan_in, fan_out), jnp.float32, -bound, bound)
        b = jax.random.uniform(kb, (1, fan_out), jnp.float32, -bound, bound)
        return w, b

    w1, b1 = lin(ks[0], ks[1], input_dim, hidden_dim)
    w2, b2 = lin(ks[2], ks[3], hidden_dim, hidden_dim)
    w3, b3 = lin(ks[4], ks[5], hidden_dim, output_dim)
    return (w1, b1, w2, b2, w3, b3)


def reference_forward(x, params, *, match_kernel=False, bf16_epilogue=False):
    """Pure-JAX reference.  match_kernel=True mirrors the kernel's precision
    (bf16 MXU operands, f32 accumulation, optional bf16 bias/ReLU epilogue)."""
    w1, b1, w2, b2, w3, b3 = params
    if not match_kernel:
        h1 = jnp.maximum(x @ w1 + b1, 0.0)
        h2 = jnp.maximum(h1 @ w2 + b2, 0.0)
        return h2 @ w3 + b3

    def mm(a, b):
        return jnp.dot(a.astype(jnp.bfloat16), b.astype(jnp.bfloat16),
                       preferred_element_type=jnp.float32)

    edt = jnp.bfloat16 if bf16_epilogue else jnp.float32
    h1 = jnp.maximum(mm(x, w1).astype(edt) + b1.astype(edt), 0)
    h2 = jnp.maximum(mm(h1, w2).astype(edt) + b2.astype(edt), 0)
    head = jnp.sum(h2.astype(jnp.float32) * w3[:, 0][None, :],
                   axis=-1, keepdims=True)
    return head + b3


if __name__ == "__main__":
    key = jax.random.PRNGKey(0)
    k_x, k_p = jax.random.split(key)

    D_in, H, D_out = 24, 256, 1
    B = 640  # 3 grid steps at batch_tile=256, last one ragged -> exercises clipping
    x = jax.random.normal(k_x, (B, D_in), jnp.float32)
    params = init_params(k_p, D_in, H, D_out)

    kind = jax.devices()[0].device_kind.lower()
    bf16_ep = ("v6" in kind) or ("v7" in kind)

    fwd = jax.jit(functools.partial(mlp_higgs_forward, batch_tile=256,
                                    bf16_epilogue=bf16_ep))
    out = jax.block_until_ready(fwd(x, params))
    assert out.shape == (B, D_out)

    # Matched-precision reference (bf16 MXU operands, same epilogue dtype).
    ref_match = reference_forward(x, params, match_kernel=True, bf16_epilogue=bf16_ep)
    assert jnp.allclose(out, ref_match, atol=2e-2, rtol=2e-2), "mismatch vs matched ref"

    # Full-f32 reference (loose tolerance covers bf16 operands / epilogue).
    ref_f32 = reference_forward(x, params)
    assert jnp.allclose(out, ref_f32, atol=1e-1, rtol=1e-1), "mismatch vs f32 reference"

    # Default (large) tile path: single-tile grid, same numerics as the tiled run.
    out_dflt = jax.block_until_ready(mlp_higgs_forward(x, params))
    assert out_dflt.shape == (B, D_out)
    assert jnp.allclose(out_dflt, out, atol=1e-5, rtol=1e-5), "tile-size dependent result"

    # Ragged tiny batch exercises the cdiv-grid / edge-clipping path.
    out_small = jax.block_until_ready(mlp_higgs_forward(x[:37], params))
    assert out_small.shape == (37, D_out)
    assert jnp.allclose(out_small, out[:37], atol=1e-5, rtol=1e-5), "ragged-batch mismatch"

    print("KERNEL_OK")
</pallas_src>

<mosaic_0001>
module attributes {stable_mosaic.version = 11 : i64} {
  func.func @_mlp_higgs_kernel(%arg0: i32, %arg1: memref<256x24xf32, #tpu.memory_space<vmem>>, %arg2: memref<24x256xbf16, #tpu.memory_space<vmem>>, %arg3: memref<1x256xf32, #tpu.memory_space<vmem>>, %arg4: memref<256x256xbf16, #tpu.memory_space<vmem>>, %arg5: memref<1x256xf32, #tpu.memory_space<vmem>>, %arg6: memref<1x256xf32, #tpu.memory_space<vmem>>, %arg7: memref<1x1xf32, #tpu.memory_space<vmem>>, %arg8: memref<256x1xf32, #tpu.memory_space<vmem>>) attributes {dimension_semantics = [#tpu.dimension_semantics<parallel>], iteration_bounds = array<i64: 3>, scalar_prefetch = 0 : i64, scratch_operands = 0 : i64, tpu.core_type = #tpu.core_type<tc>, window_params = [{transform_indices = @transform_0, window_bounds = array<i64: 256, 24>}, {pipeline_mode = #tpu.pipeline_mode<synchronous>, transform_indices = @transform_1, window_bounds = array<i64: 24, 256>}, {pipeline_mode = #tpu.pipeline_mode<synchronous>, transform_indices = @transform_2, window_bounds = array<i64: 1, 256>}, {pipeline_mode = #tpu.pipeline_mode<synchronous>, transform_indices = @transform_3, window_bounds = array<i64: 256, 256>}, {pipeline_mode = #tpu.pipeline_mode<synchronous>, transform_indices = @transform_4, window_bounds = array<i64: 1, 256>}, {pipeline_mode = #tpu.pipeline_mode<synchronous>, transform_indices = @transform_5, window_bounds = array<i64: 1, 256>}, {pipeline_mode = #tpu.pipeline_mode<synchronous>, transform_indices = @transform_6, window_bounds = array<i64: 1, 1>}, {transform_indices = @transform_7, window_bounds = array<i64: 256, 1>}]} {
    %c0 = arith.constant 0 : index
    %c0_0 = arith.constant 0 : index
    %0 = vector.load %arg1[%c0, %c0_0] : memref<256x24xf32, #tpu.memory_space<vmem>>, vector<256x24xf32>
    %1 = arith.truncf %0 : vector<256x24xf32> to vector<256x24xbf16>
    %c0_1 = arith.constant 0 : index
    %c0_2 = arith.constant 0 : index
    %2 = vector.load %arg2[%c0_1, %c0_2] : memref<24x256xbf16, #tpu.memory_space<vmem>>, vector<24x256xbf16>
    %cst = arith.constant dense<0.000000e+00> : vector<256x256xf32>
    %3 = tpu.matmul %1, %2, %cst {dimension_numbers = #tpu.dot_dimension_numbers<[1], [0], [0], [1], [0, 0, 1, 1], [], []>} : vector<256x24xbf16>, vector<24x256xbf16>, vector<256x256xf32> -> vector<256x256xf32>
    %c0_3 = arith.constant 0 : index
    %c0_4 = arith.constant 0 : index
    %4 = vector.load %arg3[%c0_3, %c0_4] : memref<1x256xf32, #tpu.memory_space<vmem>>, vector<1x256xf32>
    %5 = vector.broadcast %4 : vector<1x256xf32> to vector<256x256xf32>
    %6 = arith.addf %3, %5 : vector<256x256xf32>
    %cst_5 = arith.constant 0.000000e+00 : f32
    %7 = vector.broadcast %cst_5 : f32 to vector<256x256xf32>
    %8 = arith.maximumf %6, %7 : vector<256x256xf32>
    %9 = arith.truncf %8 : vector<256x256xf32> to vector<256x256xbf16>
    %c0_6 = arith.constant 0 : index
    %c0_7 = arith.constant 0 : index
    %10 = vector.load %arg4[%c0_6, %c0_7] : memref<256x256xbf16, #tpu.memory_space<vmem>>, vector<256x256xbf16>
    %cst_8 = arith.constant dense<0.000000e+00> : vector<256x256xf32>
    %11 = tpu.matmul %9, %10, %cst_8 {dimension_numbers = #tpu.dot_dimension_numbers<[1], [0], [0], [1], [0, 0, 1, 1], [], []>} : vector<256x256xbf16>, vector<256x256xbf16>, vector<256x256xf32> -> vector<256x256xf32>
    %c0_9 = arith.constant 0 : index
    %c0_10 = arith.constant 0 : index
    %12 = vector.load %arg5[%c0_9, %c0_10] : memref<1x256xf32, #tpu.memory_space<vmem>>, vector<1x256xf32>
    %13 = vector.broadcast %12 : vector<1x256xf32> to vector<256x256xf32>
    %14 = arith.addf %11, %13 : vector<256x256xf32>
    %cst_11 = arith.constant 0.000000e+00 : f32
    %15 = vector.broadcast %cst_11 : f32 to vector<256x256xf32>
    %16 = arith.maximumf %14, %15 : vector<256x256xf32>
    %c0_12 = arith.constant 0 : index
    %c0_13 = arith.constant 0 : index
    %17 = vector.load %arg6[%c0_12, %c0_13] : memref<1x256xf32, #tpu.memory_space<vmem>>, vector<1x256xf32>
    %18 = vector.broadcast %17 : vector<1x256xf32> to vector<256x256xf32>
    %19 = arith.mulf %16, %18 : vector<256x256xf32>
    %cst_14 = arith.constant dense<0.000000e+00> : vector<256xf32>
    %20 = vector.multi_reduction <add>, %19, %cst_14 [1] : vector<256x256xf32> to vector<256xf32>
    %21 = vector.shape_cast %20 : vector<256xf32> to vector<256x1xf32>
    %c0_15 = arith.constant 0 : index
    %c0_16 = arith.constant 0 : index
    %22 = vector.load %arg7[%c0_15, %c0_16] : memref<1x1xf32, #tpu.memory_space<vmem>>, vector<1x1xf32>
    %23 = vector.broadcast %22 : vector<1x1xf32> to vector<256x1xf32>
    %24 = arith.addf %21, %23 : vector<256x1xf32>
    %c0_17 = arith.constant 0 : index
    %c0_18 = arith.constant 0 : index
    %25 = vector.load %arg8[%c0_17, %c0_18] : memref<256x1xf32, #tpu.memory_space<vmem>>, vector<256x1xf32>
    tpu.vector_store %arg8[%c0_17, %c0_18], %24 {strides = array<i32>} : memref<256x1xf32, #tpu.memory_space<vmem>>, vector<256x1xf32>,
    return
  }
  func.func @transform_0(%arg0: i32) -> (i32, i32) {
    %c0_i32 = arith.constant 0 : i32
    %c0_i32_0 = arith.constant 0 : i32
    return %arg0, %c0_i32 : i32, i32
  }
  func.func @transform_1(%arg0: i32) -> (i32, i32) {
    %c0_i32 = arith.constant 0 : i32
    %c0_i32_0 = arith.constant 0 : i32
    %c0_i32_1 = arith.constant 0 : i32
    return %c0_i32, %c0_i32_0 : i32, i32
  }
  func.func @transform_2(%arg0: i32) -> (i32, i32) {
    %c0_i32 = arith.constant 0 : i32
    %c0_i32_0 = arith.constant 0 : i32
    %c0_i32_1 = arith.constant 0 : i32
    return %c0_i32, %c0_i32_0 : i32, i32
  }
  func.func @transform_3(%arg0: i32) -> (i32, i32) {
    %c0_i32 = arith.constant 0 : i32
    %c0_i32_0 = arith.constant 0 : i32
    %c0_i32_1 = arith.constant 0 : i32
    return %c0_i32, %c0_i32_0 : i32, i32
  }
  func.func @transform_4(%arg0: i32) -> (i32, i32) {
    %c0_i32 = arith.constant 0 : i32
    %c0_i32_0 = arith.constant 0 : i32
    %c0_i32_1 = arith.constant 0 : i32
    return %c0_i32, %c0_i32_0 : i32, i32
  }
  func.func @transform_5(%arg0: i32) -> (i32, i32) {
    %c0_i32 = arith.constant 0 : i32
    %c0_i32_0 = arith.constant 0 : i32
    %c0_i32_1 = arith.constant 0 : i32
    return %c0_i32, %c0_i32_0 : i32, i32
  }
  func.func @transform_6(%arg0: i32) -> (i32, i32) {
    %c0_i32 = arith.constant 0 : i32
    %c0_i32_0 = arith.constant 0 : i32
    %c0_i32_1 = arith.constant 0 : i32
    return %c0_i32, %c0_i32_0 : i32, i32
  }
  func.func @transform_7(%arg0: i32) -> (i32, i32) {
    %c0_i32 = arith.constant 0 : i32
    %c0_i32_0 = arith.constant 0 : i32
    return %arg0, %c0_i32 : i32, i32
  }
}

</mosaic_0001>

<bundles_post_ra>
// kernel: mlp_higgs_forward.1
= control target key start
LH: loop header
LB: loop body
LE: loop exit
PB: predicated region body
PF: predicated region fallthrough
CT: control target
= control target key end

     0   :  { %s2828_s0 = inlined_call_operand.vmem [shape: f32[640,24], index: 0, kind: input, shape index: {}]   ;;  %s2829_s1 = inlined_call_operand.vmem [shape: bf16[24,256], index: 1, kind: input, shape index: {}]   ;;  %s2830_s2 = inlined_call_operand.vmem [shape: f32[1,256], index: 2, kind: input, shape index: {}]   ;;  %s2831_s3 = inlined_call_operand.vmem [shape: bf16[256,256], index: 3, kind: input, shape index: {}]   ;;  %s2832_s4 = inlined_call_operand.vmem [shape: f32[1,256], index: 4, kind: input, shape index: {}]   ;;  %s2833_s5 = inlined_call_operand.vmem [shape: f32[1,256], index: 5, kind: input, shape index: {}]   ;;  %s2834_s6 = inlined_call_operand.<no memory space> [shape: f32[1,1], index: 6, kind: input, shape index: {}]   ;;  %s2835_s7 = inlined_call_operand.vmem [shape: f32[640,1], index: 7, kind: output, shape index: {}]  }
   0x1   :  { %v12_v0 = vstv %s2834_s6 }
   0x2   :  { %13 = vst [vmem:[#allocation2] sm:$0x1] %v12_v0 }
   0x3   :  { %s2157_s26 = smov 0   ;;  %s2159_s27 = smov 0  }
   0x4   :  { %s2161_s28 = smov 0  }
   0x5 LB: > { %s2170_s6 = sadd.s32 4294967295, %s2079_s28   ;;  %s2172_s29 = sadd.s32 1, %s2079_s28   ;;  %s2079_s28 = sphi %s2161_s28, %s2844_s28   ;;  %s2075_s27 = sphi %s2159_s27, %s2843_s27   ;;  %s2071_s26 = sphi %s2157_s26, %s2842_s26  }
   0x6   : > { %s175_s30 = ssub.s32 %s2079_s28, %s2172_s29  ;;  %s178_s8 = sadd.s32 1, %s2075_s27 }
   0x7   : > { %p176_p0 = scmp.eq.s32.totalorder %s175_s30, 0  ;;  %p188_p1 = scmp.ne.s32.totalorder %s2075_s27, %s2071_s26 }
   0x8   : > { %p189_p2 = scmp.eq.s32.totalorder %s2170_s6, 2  ;;  %p1773_p3 = scmp.ge.s32.totalorder %s2079_s28, 1 }
   0x9   : > { %s2180_s9 = scalar_select %p176_p0, %s2075_s27, %s178_s8  }
   0xa   : > { %p2182_p4 = por %p189_p2, %p188_p1  ;;  %p248_p5 = scmp.lt.s32.totalorder %s2079_s28, 4 }
   0xc   : > { %p249_p6 = pnand %p1773_p3, %p248_p5 }
   0xd   : > { %v1972_v1 = vld [vmem:[%s2829_s1 + $0x4] ss:$8 sps:$4 sm:$0xff] (!%p249_p6)   ;;  %v1974_v2 = vld [vmem:[%s2829_s1] ss:$8 sps:$4 sm:$0xff] (!%p249_p6)   ;;  %v353_v3 = vld [vmem:[%s2829_s1 + $0x10] sm:$0xff] (!%p249_p6)  ;;  %vm430_vm0 = vcmask (!%p249_p6), 1043456  }
   0xe   : > { %252 = sbr.rel (%p249_p6) target bundleno = 794 (0x31a), region = 48  ;;  %v2113_v4 = vmov (!%p249_p6), 0   ;;  %s2197_s17 = sshll.u32 (!%p249_p6), %s2170_s6, 5  ;;  %437 = vmatprep.subr.bf16.mxu0 (!%p249_p6), %v1972_v1  ;;  %v1780_v5 = vcombine.high (!%p249_p6), %v353_v3, %v353_v3  ;;  %v1779_v6 = vcombine.low (!%p249_p6), %v353_v3, %v353_v3  ;;  %v1979_v7 = vld [vmem:[%s2831_s3 + $0x4] ss:$8 sps:$4 sm:$0xff] (!%p249_p6)   ;;  %vm381_vm1 = vcmask (!%p249_p6), 195584  }
   0xf   : > { %469 = vmatprep.mubr.bf16.mxu0 (!%p249_p6), %v2113_v4  ;;  %p288_p7 = scmp.lt.s32.totalorder (!%p249_p6), %s2197_s17, 79  ;;  %438 = vmatpush1.bf16.msra.mxu0 (!%p249_p6), %v1974_v2  ;;  %v1977_v9 = vld [vmem:[%s2831_s3] ss:$8 sps:$4 sm:$0xff] (!%p249_p6)   ;;  %v1982_v10 = vld [vmem:[%s2831_s3 + $0x14] ss:$8 sps:$4 sm:$0xff] (!%p249_p6)   ;;  %s280_s30 = sand.u32 (!%p249_p6), 1, %s2071_s26  }
  0x10   : > { %1781 = vmatprep.subr.msk.bf16.mxu0 (!%p249_p6), %vm430_vm0, %v1780_v5  ;;  %v432_v8 = vsel (!%p249_p6), %vm430_vm0, %v1779_v6, 0  ;;  %1851 = vmatprep.subr.bf16.mxu1 (!%p249_p6), %v1979_v7  ;;  %v1980_v13 = vld [vmem:[%s2831_s3 + $0x10] ss:$8 sps:$4 sm:$0xff] (!%p249_p6)   ;;  %v1985_v15 = vld [vmem:[%s2831_s3 + $0x24] ss:$8 sps:$4 sm:$0xff] (!%p249_p6)   ;;  %s1774_s11 = sshll.u32 (!%p249_p6), %s280_s30, 8 }
  0x11   : > { %1867 = vmatpush1.bf16.msra.mxu1 (!%p249_p6), %v1977_v9  ;;  %v1983_v18 = vld [vmem:[%s2831_s3 + $0x20] ss:$8 sps:$4 sm:$0xff] (!%p249_p6)   ;;  %v1988_v19 = vld [vmem:[%s2831_s3 + $0x34] ss:$8 sps:$4 sm:$0xff] (!%p249_p6)   ;;  %v1986_v21 = vld [vmem:[%s2831_s3 + $0x30] ss:$8 sps:$4 sm:$0xff] (!%p249_p6)  }
  0x12   : > { %1852 = vmatprep.subr.bf16.mxu1 (!%p249_p6), %v1982_v10  ;;  %v1989_v23 = vld [vmem:[%s2831_s3 + $0x40] ss:$8 sps:$4 sm:$0xff] (!%p249_p6)   ;;  %v1991_v24 = vld [vmem:[%s2831_s3 + $0x44] ss:$8 sps:$4 sm:$0xff] (!%p249_p6)   ;;  %v1994_v26 = vld [vmem:[%s2831_s3 + $0x54] ss:$8 sps:$4 sm:$0xff] (!%p249_p6)  }
  0x13   : > { %440 = vmatpush1.bf16.msra.mxu0 (!%p249_p6), %v432_v8  ;;  %v1992_v28 = vld [vmem:[%s2831_s3 + $0x50] ss:$8 sps:$4 sm:$0xff] (!%p249_p6)   ;;  %v1997_v29 = vld [vmem:[%s2831_s3 + $0x64] ss:$8 sps:$4 sm:$0xff] (!%p249_p6)   ;;  %v1995_v32 = vld [vmem:[%s2831_s3 + $0x60] ss:$8 sps:$4 sm:$0xff] (!%p249_p6)  }
  0x14   : > { %930 = vmatprep.subr.bf16.mxu0 (!%p249_p6), %v1979_v7  ;;  %v2000_v33 = vld [vmem:[%s2831_s3 + $0x74] ss:$8 sps:$4 sm:$0xff] (!%p249_p6)   ;;  %v1998_v35 = vld [vmem:[%s2831_s3 + $0x70] ss:$8 sps:$4 sm:$0xff] (!%p249_p6)   ;;  %v2003_v36 = vld [vmem:[%s2831_s3 + $0x84] ss:$8 sps:$4 sm:$0xff] (!%p249_p6)  }
  0x15   : > { %s289_s20 = scalar_select %p288_p7, %s2197_s17, 79  ;;  %1868 = vmatpush1.bf16.msra.mxu1 %v1980_v13  ;;  %v2001_v39 = vld [vmem:[%s2831_s3 + $0x80] ss:$8 sps:$4 sm:$0xff]   ;;  %v2006_v40 = vld [vmem:[%s2831_s3 + $0x94] ss:$8 sps:$4 sm:$0xff]   ;;  %vm1398_vm2 = vcmask 7168  }
  0x16   : > { %1853 = vmatprep.subr.bf16.mxu1 %v1985_v15  ;;  %v2004_v42 = vld [vmem:[%s2831_s3 + $0x90] ss:$8 sps:$4 sm:$0xff]   ;;  %v2009_v43 = vld [vmem:[%s2831_s3 + $0xa4] ss:$8 sps:$4 sm:$0xff]   ;;  %v2007_v46 = vld [vmem:[%s2831_s3 + $0xa0] ss:$8 sps:$4 sm:$0xff]  }
  0x17   : > { %s1776_s25 = sshll.u32 %s289_s20, 3  ;;  %v2012_v47 = vld [vmem:[%s2831_s3 + $0xb4] ss:$8 sps:$4 sm:$0xff]   ;;  %v2010_v49 = vld [vmem:[%s2831_s3 + $0xb0] ss:$8 sps:$4 sm:$0xff]   ;;  %s2592_s12 = scalar_lea.vmem [#allocation3], %s1774_s11  }
  0x18   : > { %s2213_s8 = scalar_lea.vmem %s2828_s0, %s1776_s25  ;;  %v2015_v50 = vld [vmem:[%s2831_s3 + $0xc4] ss:$8 sps:$4 sm:$0xff]   ;;  %v2013_v53 = vld [vmem:[%s2831_s3 + $0xc0] ss:$8 sps:$4 sm:$0xff]   ;;  %v2018_v54 = vld [vmem:[%s2831_s3 + $0xd4] ss:$8 sps:$4 sm:$0xff]  }
  0x19   : > { %v303_v11 = vld [vmem:[%s2213_s8] sm:$0xff]  ;;  %v304_v12 = vld [vmem:[%s2213_s8 + $0x8] sm:$0xff]  ;;  %v305_v16 = vld [vmem:[%s2213_s8 + $0x10] sm:$0xff]  ;;  %1869 = vmatpush1.bf16.msra.mxu1 %v1983_v18  ;;  %s1439_s26 = ssub.s32 (%p2182_p4), 80, %s2197_s17  ;;  %s1848_s13 = sshll.u32 (%p2182_p4), %s2170_s6, 8 }
  0x1a   : > { %v335_v14 = vpack.c.bf16 %v304_v12, %v303_v11  ;;  %v306_v17 = vld [vmem:[%s2213_s8 + $0x18] sm:$0xff]  ;;  %1854 = vmatprep.subr.bf16.mxu1 %v1988_v19  ;;  %v307_v22 = vld [vmem:[%s2213_s8 + $0x20] sm:$0xff]  ;;  %v308_v25 = vld [vmem:[%s2213_s8 + $0x28] sm:$0xff]  ;;  %p1440_p8 = scmp.lt.s32.totalorder (%p2182_p4), %s1439_s26, 32  ;;  %s2696_s16 = scalar_lea.vmem (%p2182_p4), %s2835_s7, %s1848_s13  }
  0x1b   : > { %v336_v20 = vpack.c.bf16 %v306_v17, %v305_v16  ;;  %v337_v27 = vpack.c.bf16 %v308_v25, %v307_v22  ;;  %v309_v30 = vld [vmem:[%s2213_s8 + $0x30] sm:$0xff]  ;;  %v310_v31 = vld [vmem:[%s2213_s8 + $0x38] sm:$0xff]  ;;  %v311_v37 = vld [vmem:[%s2213_s8 + $0x40] sm:$0xff]  ;;  %v356_v25 = vlaneseq }
  0x1c   : > { %1782 = vmatmul.mubr.msk.bf16.vlgmr.msra.gmra.mrb[0].mxu0 %vm381_vm1, %v335_v14  ;;  %v338_v34 = vpack.c.bf16 %v310_v31, %v309_v30  ;;  %v312_v38 = vld [vmem:[%s2213_s8 + $0x48] sm:$0xff]  ;;  %v313_v44 = vld [vmem:[%s2213_s8 + $0x50] sm:$0xff]  ;;  %v314_v45 = vld [vmem:[%s2213_s8 + $0x58] sm:$0xff] }
  0x1d   : > { %479 = vmatprep.mubr.bf16.mxu0 %v2113_v4  ;;  %931 = vmatpush1.bf16.msra.mxu0 %v1977_v9  ;;  %v339_v41 = vpack.c.bf16 %v312_v38, %v311_v37  ;;  %v340_v48 = vpack.c.bf16 %v314_v45, %v313_v44  ;;  %v315_v51 = vld [vmem:[%s2213_s8 + $0x60] sm:$0xff]  ;;  %v316_v52 = vld [vmem:[%s2213_s8 + $0x68] sm:$0xff]  ;;  %v2016_v56 = vld [vmem:[%s2831_s3 + $0xd0] ss:$8 sps:$4 sm:$0xff]  }
  0x1e   : > { %932 = vmatprep.subr.bf16.mxu0 %v1982_v10  ;;  %1870 = vmatpush1.bf16.msra.mxu1 %v1986_v21  ;;  %v341_v55 = vpack.c.bf16 %v316_v52, %v315_v51  ;;  %v317_v57 = vld [vmem:[%s2213_s8 + $0x70] sm:$0xff]  ;;  %v318_v58 = vld [vmem:[%s2213_s8 + $0x78] sm:$0xff]  ;;  %v319_v60 = vld [vmem:[%s2213_s8 + $0x80] sm:$0xff] }
  0x1f   : > { %1855 = vmatprep.subr.bf16.mxu1 %v1991_v24  ;;  %v342_v59 = vpack.c.bf16 %v318_v58, %v317_v57  ;;  %v320_v61 = vld [vmem:[%s2213_s8 + $0x88] sm:$0xff]  ;;  %v321_v63 = vld [vmem:[%s2213_s8 + $0x90] sm:$0xff]  ;;  %v322_v0 = vld [vmem:[%s2213_s8 + $0x98] sm:$0xff] }
  0x20   : > { %v343_v62 = vpack.c.bf16 %v320_v61, %v319_v60  ;;  %v344_v1 = vpack.c.bf16 %v322_v0, %v321_v63  ;;  %v323_v2 = vld [vmem:[%s2213_s8 + $0xa0] sm:$0xff]  ;;  %v324_v3 = vld [vmem:[%s2213_s8 + $0xa8] sm:$0xff]  ;;  %v325_v6 = vld [vmem:[%s2213_s8 + $0xb0] sm:$0xff] }
  0x21   : > { %933 = vmatpush1.bf16.msra.mxu0 %v1980_v13  ;;  %v345_v5 = vpack.c.bf16 %v324_v3, %v323_v2  ;;  %v326_v7 = vld [vmem:[%s2213_s8 + $0xb8] sm:$0xff]  ;;  %v2021_v9 = vld [vmem:[%s2831_s3 + $0xe4] ss:$8 sps:$4 sm:$0xff]   ;;  %v2019_v10 = vld [vmem:[%s2831_s3 + $0xe0] ss:$8 sps:$4 sm:$0xff]  }
  0x22   : > { %934 = vmatprep.subr.bf16.mxu0 %v1985_v15  ;;  %1871 = vmatpush1.bf16.msra.mxu1 %v1989_v23  ;;  %v346_v8 = vpack.c.bf16 %v326_v7, %v325_v6  ;;  %v2024_v11 = vld [vmem:[%s2831_s3 + $0xf4] ss:$8 sps:$4 sm:$0xff]   ;;  %v327_v12 = vld [vmem:[%s2213_s8 + $0xc0] sm:$0xff]  ;;  %v328_v13 = vld [vmem:[%s2213_s8 + $0xc8] sm:$0xff] }
  0x23   : > { %1856 = vmatprep.subr.bf16.mxu1 %v1994_v26  ;;  %v2022_v14 = vld [vmem:[%s2831_s3 + $0xf0] ss:$8 sps:$4 sm:$0xff]   ;;  %v347_v15 = vpack.c.bf16 %v328_v13, %v327_v12 }
  0x24   : > { %1783 = vmatmul.mubr.msk.bf16.gmra.mrb[4].mxu0 %vm381_vm1, %v336_v20  ;;  %v329_v16 = vld [vmem:[%s2213_s8 + $0xd0] sm:$0xff]  ;;  %v330_v17 = vld [vmem:[%s2213_s8 + $0xd8] sm:$0xff]  ;;  %v332_v20 = vld [vmem:[%s2213_s8 + $0xe8] sm:$0xff] }
  0x25   : > { %489 = vmatprep.mubr.bf16.mxu0 %v2113_v4  ;;  %935 = vmatpush1.bf16.msra.mxu0 %v1983_v18  ;;  %v348_v18 = vpack.c.bf16 %v330_v17, %v329_v16  ;;  %v333_v22 = vld [vmem:[%s2213_s8 + $0xf0] sm:$0xff] }
  0x26   : > { %936 = vmatprep.subr.bf16.mxu0 %v1988_v19  ;;  %1872 = vmatpush1.bf16.msra.mxu1 %v1992_v28  ;;  %v331_v19 = vld [vmem:[%s2213_s8 + $0xe0] sm:$0xff] }
  0x27   : > { %1857 = vmatprep.subr.bf16.mxu1 %v1997_v29 }
  0x29   : > { %937 = vmatpush1.bf16.msra.mxu0 %v1986_v21  ;;  %v349_v21 = vpack.c.bf16 %v332_v20, %v331_v19 }
  0x2a   : > { %938 = vmatprep.subr.bf16.mxu0 %v1991_v24  ;;  %1873 = vmatpush1.bf16.msra.mxu1 %v1995_v32 }
  0x2b   : > { %1858 = vmatprep.subr.bf16.mxu1 %v2000_v33 }
  0x2c   : > { %1784 = vmatmul.mubr.msk.bf16.gmra.mrb[8].mxu0 %vm381_vm1, %v337_v27 }
  0x2d   : > { %499 = vmatprep.mubr.bf16.mxu0 %v2113_v4  ;;  %939 = vmatpush1.bf16.msra.mxu0 %v1989_v23  ;;  %v334_v23 = vld [vmem:[%s2213_s8 + $0xf8] sm:$0xff] }
  0x2e   : > { %940 = vmatprep.subr.bf16.mxu0 %v1994_v26  ;;  %1874 = vmatpush1.bf16.msra.mxu1 %v1998_v35  ;;  %v350_v24 = vpack.c.bf16 %v334_v23, %v333_v22  ;;  %v357_v26 = vshrl.u32 %v356_v25, 7 }
  0x2f   : > { %1859 = vmatprep.subr.bf16.mxu1 %v2003_v36 }
  0x30   : > { %v2365_v27 = vsub.s32 0, %v357_v26 }
  0x31   : > { %941 = vmatpush1.bf16.msra.mxu0 %v1992_v28  ;;  %v354_v28 = vld [vmem:[%s2830_s2] sm:$0x3] }
  0x32   : > { %942 = vmatprep.subr.bf16.mxu0 %v1997_v29  ;;  %1875 = vmatpush1.bf16.msra.mxu1 %v2001_v39  ;;  %v2370_v29 = vsub.s32 1, %v357_v26  ;;  %v2373_v30 = vrot.slane %v354_v28, %v2365_v27 }
  0x33   : > { %1860 = vmatprep.subr.bf16.mxu1 %v2006_v40 }
  0x34   : > { %1785 = vmatmul.mubr.msk.bf16.gmra.mrb[12].mxu0 %vm381_vm1, %v338_v34 }
  0x35   : > { %509 = vmatprep.mubr.bf16.mxu0 %v2113_v4  ;;  %943 = vmatpush1.bf16.msra.mxu0 %v1995_v32 }
  0x36   : > { %944 = vmatprep.subr.bf16.mxu0 %v2000_v33  ;;  %1876 = vmatpush1.bf16.msra.mxu1 %v2004_v42 }
  0x37   : > { %1861 = vmatprep.subr.bf16.mxu1 %v2009_v43 }
  0x39   : > { %945 = vmatpush1.bf16.msra.mxu0 %v1998_v35 }
  0x3a   : > { %946 = vmatprep.subr.bf16.mxu0 %v2003_v36  ;;  %1877 = vmatpush1.bf16.msra.mxu1 %v2007_v46 }
  0x3b   : > { %1862 = vmatprep.subr.bf16.mxu1 %v2012_v47 }
  0x3c   : > { %1786 = vmatmul.mubr.msk.bf16.gmra.mrb[16].mxu0 %vm381_vm1, %v339_v41 }
  0x3d   : > { %519 = vmatprep.mubr.bf16.mxu0 %v2113_v4  ;;  %947 = vmatpush1.bf16.msra.mxu0 %v2001_v39 }
  0x3e   : > { %948 = vmatprep.subr.bf16.mxu0 %v2006_v40  ;;  %1878 = vmatpush1.bf16.msra.mxu1 %v2010_v49 }
  0x3f   : > { %1863 = vmatprep.subr.bf16.mxu1 %v2015_v50 }
  0x41   : > { %949 = vmatpush1.bf16.msra.mxu0 %v2004_v42 }
  0x42   : > { %950 = vmatprep.subr.bf16.mxu0 %v2009_v43  ;;  %1879 = vmatpush1.bf16.msra.mxu1 %v2013_v53 }
  0x43   : > { %1864 = vmatprep.subr.bf16.mxu1 %v2018_v54 }
  0x44   : > { %1787 = vmatmul.mubr.msk.bf16.gmra.mrb[20].mxu0 %vm381_vm1, %v340_v48 }
  0x45   : > { %529 = vmatprep.mubr.bf16.mxu0 %v2113_v4  ;;  %951 = vmatpush1.bf16.msra.mxu0 %v2007_v46 }
  0x46   : > { %952 = vmatprep.subr.bf16.mxu0 %v2012_v47  ;;  %1880 = vmatpush1.bf16.msra.mxu1 %v2016_v56 }
  0x47   : > { %1865 = vmatprep.subr.bf16.mxu1 %v2021_v9 }
  0x49   : > { %953 = vmatpush1.bf16.msra.mxu0 %v2010_v49 }
  0x4a   : > { %954 = vmatprep.subr.bf16.mxu0 %v2015_v50  ;;  %1881 = vmatpush1.bf16.msra.mxu1 %v2019_v10 }
  0x4b   : > { %1866 = vmatprep.subr.bf16.mxu1 %v2024_v11 }
  0x4c   : > { %1788 = vmatmul.mubr.msk.bf16.gmra.mrb[24].mxu0 %vm381_vm1, %v341_v55 }
  0x4d   : > { %539 = vmatprep.mubr.bf16.mxu0 %v2113_v4  ;;  %955 = vmatpush1.bf16.msra.mxu0 %v2013_v53 }
  0x4e   : > { %956 = vmatprep.subr.bf16.mxu0 %v2018_v54  ;;  %1882 = vmatpush1.bf16.msra.mxu1 %v2022_v14 }
  0x51   : > { %957 = vmatpush1.bf16.msra.mxu0 %v2016_v56 }
  0x52   : > { %958 = vmatprep.subr.bf16.mxu0 %v2021_v9 }
  0x54   : > { %1789 = vmatmul.mubr.msk.bf16.gmra.mrb[28].mxu0 %vm381_vm1, %v342_v59 }
  0x55   : > { %549 = vmatprep.mubr.bf16.mxu0 %v2113_v4  ;;  %959 = vmatpush1.bf16.msra.mxu0 %v2019_v10 }
  0x56   : > { %960 = vmatprep.subr.bf16.mxu0 %v2024_v11 }
  0x59   : > { %961 = vmatpush1.bf16.msra.mxu0 %v2022_v14 }
  0x5c   : > { %1790 = vmatmul.mubr.msk.bf16.gmra.mrb[32].mxu0 %vm381_vm1, %v343_v62 }
  0x5d   : > { %559 = vmatprep.mubr.bf16.mxu0 %v2113_v4 }
  0x64   : > { %1791 = vmatmul.mubr.msk.bf16.gmra.mrb[36].mxu0 %vm381_vm1, %v344_v1 }
  0x65   : > { %569 = vmatprep.mubr.bf16.mxu0 %v2113_v4 }
  0x6c   : > { %1792 = vmatmul.mubr.msk.bf16.gmra.mrb[40].mxu0 %vm381_vm1, %v345_v5 }
  0x6d   : > { %579 = vmatprep.mubr.bf16.mxu0 %v2113_v4 }
  0x74   : > { %1793 = vmatmul.mubr.msk.bf16.gmra.mrb[44].mxu0 %vm381_vm1, %v346_v8 }
  0x75   : > { %589 = vmatprep.mubr.bf16.mxu0 %v2113_v4 }
  0x7c   : > { %1794 = vmatmul.mubr.msk.bf16.gmra.mrb[48].mxu0 %vm381_vm1, %v347_v15 }
  0x7d   : > { %599 = vmatprep.mubr.bf16.mxu0 %v2113_v4 }
  0x84   : > { %1795 = vmatmul.mubr.msk.bf16.gmra.mrb[52].mxu0 %vm381_vm1, %v348_v18 }
  0x85   : > { %609 = vmatprep.mubr.bf16.mxu0 %v2113_v4 }
  0x8c   : > { %1796 = vmatmul.mubr.msk.bf16.gmra.mrb[56].mxu0 %vm381_vm1, %v349_v21 }
  0x8d   : > { %619 = vmatprep.mubr.bf16.mxu0 %v2113_v4  ;;  %v2376_v4 = vrot.slane %v354_v28, %v2370_v29 }
  0x94   : > { %1797 = vmatmul.mubr.msk.bf16.gmra.mrb[60].mxu0 %vm381_vm1, %v350_v24 }
  0xef   : > { %v471_v31 = vpop.f32.mrb[0].mxu0 }
  0xf0   : > { %v472_v32 = vadd.f32 %v471_v31, %v2373_v30  ;;  %v473_v33 = vpop.f32.mrb[1].mxu0 }
  0xf1   : > { %v474_v34 = vadd.f32 %v473_v33, %v2376_v4  ;;  %v475_v35 = vpop.f32.mrb[2].mxu0 }
  0xf2   : > { %v476_v36 = vadd.f32 %v475_v35, %v2373_v30  ;;  %v477_v37 = vpop.f32.mrb[3].mxu0  ;;  %v630_v39 = vmax.f32 %v472_v32, 0.0 }
  0xf3   : > { %v478_v38 = vadd.f32 %v477_v37, %v2376_v4  ;;  %v631_v41 = vmax.f32 %v474_v34, 0.0 }
  0xf4   : > { %v632_v40 = vmax.f32 %v476_v36, 0.0 }
  0xf5   : > { %v633_v42 = vmax.f32 %v478_v38, 0.0 }
  0xf6   : > { %v694_v43 = vpack.c.bf16 %v632_v40, %v630_v39 }
  0xf7   : > { %v695_v44 = vpack.c.bf16 %v633_v42, %v631_v41  ;;  %v481_v45 = vpop.f32.mrb[4].mxu0 }
  0xf8   : > { %v482_v46 = vadd.f32 %v481_v45, %v2373_v30  ;;  %v483_v47 = vpop.f32.mrb[5].mxu0 }
  0xf9   : > { %v484_v48 = vadd.f32 %v483_v47, %v2376_v4  ;;  %v485_v49 = vpop.f32.mrb[6].mxu0  ;;  %962 = vmatprep.mubr.bf16.mxu0 %v695_v44 }
  0xfa   : > { %v486_v50 = vadd.f32 %v485_v49, %v2373_v30  ;;  %v487_v51 = vpop.f32.mrb[7].mxu0  ;;  %963 = vmatmul.mubr.bf16.vlgmr.msra.gmra.mrb[64].mxu0 %v694_v43  ;;  %v634_v53 = vmax.f32 %v482_v46, 0.0 }
  0xfb   : > { %v488_v52 = vadd.f32 %v487_v51, %v2376_v4  ;;  %v635_v55 = vmax.f32 %v484_v48, 0.0 }
  0xfc   : > { %v636_v54 = vmax.f32 %v486_v50, 0.0 }
  0xfd   : > { %v637_v56 = vmax.f32 %v488_v52, 0.0 }
  0xfe   : > { %v696_v57 = vpack.c.bf16 %v636_v54, %v634_v53 }
  0xff   : > { %v697_v58 = vpack.c.bf16 %v637_v56, %v635_v55  ;;  %v491_v59 = vpop.f32.mrb[8].mxu0 }
 0x100   : > { %v492_v60 = vadd.f32 %v491_v59, %v2373_v30  ;;  %v493_v61 = vpop.f32.mrb[9].mxu0 }
 0x101   : > { %v494_v62 = vadd.f32 %v493_v61, %v2376_v4  ;;  %v495_v63 = vpop.f32.mrb[10].mxu0  ;;  %972 = vmatprep.mubr.bf16.mxu0 %v697_v58 }
 0x102   : > { %v496_v0 = vadd.f32 %v495_v63, %v2373_v30  ;;  %v497_v1 = vpop.f32.mrb[11].mxu0  ;;  %973 = vmatmul.mubr.bf16.gmra.mrb[68].mxu0 %v696_v57  ;;  %v638_v3 = vmax.f32 %v492_v60, 0.0 }
 0x103   : > { %v498_v2 = vadd.f32 %v497_v1, %v2376_v4  ;;  %v639_v6 = vmax.f32 %v494_v62, 0.0 }
 0x104   : > { %v640_v5 = vmax.f32 %v496_v0, 0.0 }
 0x105   : > { %v641_v7 = vmax.f32 %v498_v2, 0.0 }
 0x106   : > { %v698_v8 = vpack.c.bf16 %v640_v5, %v638_v3 }
 0x107   : > { %v699_v9 = vpack.c.bf16 %v641_v7, %v639_v6  ;;  %v501_v10 = vpop.f32.mrb[12].mxu0 }
 0x108   : > { %v502_v11 = vadd.f32 %v501_v10, %v2373_v30  ;;  %v503_v12 = vpop.f32.mrb[13].mxu0 }
 0x109   : > { %v504_v13 = vadd.f32 %v503_v12, %v2376_v4  ;;  %v505_v14 = vpop.f32.mrb[14].mxu0  ;;  %982 = vmatprep.mubr.bf16.mxu0 %v699_v9 }
 0x10a   : > { %v506_v15 = vadd.f32 %v505_v14, %v2373_v30  ;;  %v507_v16 = vpop.f32.mrb[15].mxu0  ;;  %983 = vmatmul.mubr.bf16.gmra.mrb[72].mxu0 %v698_v8  ;;  %v642_v18 = vmax.f32 %v502_v11, 0.0 }
 0x10b   : > { %v508_v17 = vadd.f32 %v507_v16, %v2376_v4  ;;  %v643_v20 = vmax.f32 %v504_v13, 0.0 }
 0x10c   : > { %v644_v19 = vmax.f32 %v506_v15, 0.0 }
 0x10d   : > { %v645_v21 = vmax.f32 %v508_v17, 0.0 }
 0x10e   : > { %v700_v22 = vpack.c.bf16 %v644_v19, %v642_v18 }
 0x10f   : > { %v511_v23 = vpop.f32.mrb[16].mxu0  ;;  %v701_v24 = vpack.c.bf16 %v645_v21, %v643_v20 }
 0x110   : > { %v512_v25 = vadd.f32 %v511_v23, %v2373_v30  ;;  %v513_v26 = vpop.f32.mrb[17].mxu0 }
 0x111   : > { %v514_v28 = vadd.f32 %v513_v26, %v2376_v4  ;;  %v515_v31 = vpop.f32.mrb[18].mxu0  ;;  %992 = vmatprep.mubr.bf16.mxu1 %v701_v24 }
 0x112   : > { %v516_v32 = vadd.f32 %v515_v31, %v2373_v30  ;;  %v517_v33 = vpop.f32.mrb[19].mxu0  ;;  %993 = vmatmul.mubr.bf16.vlgmr.msra.gmra.mrb[0].mxu1 %v700_v22  ;;  %v646_v35 = vmax.f32 %v512_v25, 0.0 }
 0x113   : > { %v518_v34 = vadd.f32 %v517_v33, %v2376_v4  ;;  %v647_v37 = vmax.f32 %v514_v28, 0.0 }
 0x114   : > { %v648_v36 = vmax.f32 %v516_v32, 0.0 }
 0x115   : > { %v649_v38 = vmax.f32 %v518_v34, 0.0 }
 0x116   : > { %v702_v39 = vpack.c.bf16 %v648_v36, %v646_v35 }
 0x117   : > { %v703_v40 = vpack.c.bf16 %v649_v38, %v647_v37  ;;  %v521_v41 = vpop.f32.mrb[20].mxu0 }
 0x118   : > { %v522_v42 = vadd.f32 %v521_v41, %v2373_v30  ;;  %v523_v43 = vpop.f32.mrb[21].mxu0 }
 0x119   : > { %v524_v44 = vadd.f32 %v523_v43, %v2376_v4  ;;  %v525_v45 = vpop.f32.mrb[22].mxu0  ;;  %1002 = vmatprep.mubr.bf16.mxu1 %v703_v40 }
 0x11a   : > { %v526_v46 = vadd.f32 %v525_v45, %v2373_v30  ;;  %v527_v47 = vpop.f32.mrb[23].mxu0  ;;  %1003 = vmatmul.mubr.bf16.gmra.mrb[4].mxu1 %v702_v39  ;;  %v650_v49 = vmax.f32 %v522_v42, 0.0 }
 0x11b   : > { %v528_v48 = vadd.f32 %v527_v47, %v2376_v4  ;;  %v651_v51 = vmax.f32 %v524_v44, 0.0 }
 0x11c   : > { %v652_v50 = vmax.f32 %v526_v46, 0.0 }
 0x11d   : > { %v653_v52 = vmax.f32 %v528_v48, 0.0 }
 0x11e   : > { %v704_v53 = vpack.c.bf16 %v652_v50, %v650_v49 }
 0x11f   : > { %v705_v54 = vpack.c.bf16 %v653_v52, %v651_v51  ;;  %v531_v55 = vpop.f32.mrb[24].mxu0 }
 0x120   : > { %v532_v56 = vadd.f32 %v531_v55, %v2373_v30  ;;  %v533_v57 = vpop.f32.mrb[25].mxu0 }
 0x121   : > { %v534_v58 = vadd.f32 %v533_v57, %v2376_v4  ;;  %v535_v59 = vpop.f32.mrb[26].mxu0  ;;  %1012 = vmatprep.mubr.bf16.mxu1 %v705_v54 }
 0x122   : > { %v536_v60 = vadd.f32 %v535_v59, %v2373_v30  ;;  %v537_v61 = vpop.f32.mrb[27].mxu0  ;;  %1013 = vmatmul.mubr.bf16.gmra.mrb[8].mxu1 %v704_v53  ;;  %v654_v63 = vmax.f32 %v532_v56, 0.0 }
 0x123   : > { %v538_v62 = vadd.f32 %v537_v61, %v2376_v4  ;;  %v655_v1 = vmax.f32 %v534_v58, 0.0 }
 0x124   : > { %v656_v0 = vmax.f32 %v536_v60, 0.0 }
 0x125   : > { %v657_v2 = vmax.f32 %v538_v62, 0.0 }
 0x126   : > { %v706_v3 = vpack.c.bf16 %v656_v0, %v654_v63 }
 0x127   : > { %v707_v5 = vpack.c.bf16 %v657_v2, %v655_v1  ;;  %v541_v6 = vpop.f32.mrb[28].mxu0 }
 0x128   : > { %v542_v7 = vadd.f32 %v541_v6, %v2373_v30  ;;  %v543_v8 = vpop.f32.mrb[29].mxu0 }
 0x129   : > { %v544_v9 = vadd.f32 %v543_v8, %v2376_v4  ;;  %v545_v10 = vpop.f32.mrb[30].mxu0  ;;  %1022 = vmatprep.mubr.bf16.mxu1 %v707_v5 }
 0x12a   : > { %v546_v11 = vadd.f32 %v545_v10, %v2373_v30  ;;  %v547_v12 = vpop.f32.mrb[31].mxu0  ;;  %1023 = vmatmul.mubr.bf16.gmra.mrb[12].mxu1 %v706_v3  ;;  %v658_v14 = vmax.f32 %v542_v7, 0.0 }
 0x12b   : > { %v548_v13 = vadd.f32 %v547_v12, %v2376_v4  ;;  %v659_v16 = vmax.f32 %v544_v9, 0.0 }
 0x12c   : > { %v660_v15 = vmax.f32 %v546_v11, 0.0 }
 0x12d   : > { %v661_v17 = vmax.f32 %v548_v13, 0.0 }
 0x12e   : > { %v708_v18 = vpack.c.bf16 %v660_v15, %v658_v14 }
 0x12f   : > { %v709_v19 = vpack.c.bf16 %v661_v17, %v659_v16  ;;  %v551_v20 = vpop.f32.mrb[32].mxu0 }
 0x130   : > { %v552_v21 = vadd.f32 %v551_v20, %v2373_v30  ;;  %v553_v22 = vpop.f32.mrb[33].mxu0 }
 0x131   : > { %v554_v23 = vadd.f32 %v553_v22, %v2376_v4  ;;  %v555_v24 = vpop.f32.mrb[34].mxu0  ;;  %1032 = vmatprep.mubr.bf16.mxu1 %v709_v19 }
 0x132   : > { %v556_v25 = vadd.f32 %v555_v24, %v2373_v30  ;;  %v557_v26 = vpop.f32.mrb[35].mxu0  ;;  %1033 = vmatmul.mubr.bf16.gmra.mrb[16].mxu1 %v708_v18  ;;  %v662_v31 = vmax.f32 %v552_v21, 0.0 }
 0x133   : > { %v558_v28 = vadd.f32 %v557_v26, %v2376_v4  ;;  %v663_v33 = vmax.f32 %v554_v23, 0.0 }
 0x134   : > { %v664_v32 = vmax.f32 %v556_v25, 0.0 }
 0x135   : > { %v665_v34 = vmax.f32 %v558_v28, 0.0 }
 0x136   : > { %v710_v35 = vpack.c.bf16 %v664_v32, %v662_v31 }
 0x137   : > { %v711_v36 = vpack.c.bf16 %v665_v34, %v663_v33  ;;  %v561_v37 = vpop.f32.mrb[36].mxu0 }
 0x138   : > { %v562_v38 = vadd.f32 %v561_v37, %v2373_v30  ;;  %v563_v39 = vpop.f32.mrb[37].mxu0 }
 0x139   : > { %v564_v40 = vadd.f32 %v563_v39, %v2376_v4  ;;  %v565_v41 = vpop.f32.mrb[38].mxu0  ;;  %1042 = vmatprep.mubr.bf16.mxu1 %v711_v36 }
 0x13a   : > { %v566_v42 = vadd.f32 %v565_v41, %v2373_v30  ;;  %v567_v43 = vpop.f32.mrb[39].mxu0  ;;  %1043 = vmatmul.mubr.bf16.gmra.mrb[20].mxu1 %v710_v35  ;;  %v666_v45 = vmax.f32 %v562_v38, 0.0 }
 0x13b   : > { %v568_v44 = vadd.f32 %v567_v43, %v2376_v4  ;;  %v667_v47 = vmax.f32 %v564_v40, 0.0 }
 0x13c   : > { %v668_v46 = vmax.f32 %v566_v42, 0.0 }
 0x13d   : > { %v669_v48 = vmax.f32 %v568_v44, 0.0 }
 0x13e   : > { %v712_v49 = vpack.c.bf16 %v668_v46, %v666_v45 }
 0x13f   : > { %v713_v50 = vpack.c.bf16 %v669_v48, %v667_v47  ;;  %v571_v51 = vpop.f32.mrb[40].mxu0 }
 0x140   : > { %v572_v52 = vadd.f32 %v571_v51, %v2373_v30  ;;  %v573_v53 = vpop.f32.mrb[41].mxu0 }
 0x141   : > { %v574_v54 = vadd.f32 %v573_v53, %v2376_v4  ;;  %v575_v55 = vpop.f32.mrb[42].mxu0  ;;  %1052 = vmatprep.mubr.bf16.mxu1 %v713_v50 }
 0x142   : > { %v576_v56 = vadd.f32 %v575_v55, %v2373_v30  ;;  %v577_v57 = vpop.f32.mrb[43].mxu0  ;;  %1053 = vmatmul.mubr.bf16.gmra.mrb[24].mxu1 %v712_v49  ;;  %v670_v59 = vmax.f32 %v572_v52, 0.0 }
 0x143   : > { %v578_v58 = vadd.f32 %v577_v57, %v2376_v4  ;;  %v671_v61 = vmax.f32 %v574_v54, 0.0 }
 0x144   : > { %v672_v60 = vmax.f32 %v576_v56, 0.0 }
 0x145   : > { %v673_v62 = vmax.f32 %v578_v58, 0.0 }
 0x146   : > { %v714_v63 = vpack.c.bf16 %v672_v60, %v670_v59 }
 0x147   : > { %v715_v0 = vpack.c.bf16 %v673_v62, %v671_v61  ;;  %v581_v1 = vpop.f32.mrb[44].mxu0 }
 0x148   : > { %v582_v2 = vadd.f32 %v581_v1, %v2373_v30  ;;  %v583_v3 = vpop.f32.mrb[45].mxu0 }
 0x149   : > { %v584_v5 = vadd.f32 %v583_v3, %v2376_v4  ;;  %v585_v6 = vpop.f32.mrb[46].mxu0  ;;  %1062 = vmatprep.mubr.bf16.mxu1 %v715_v0 }
 0x14a   : > { %v586_v7 = vadd.f32 %v585_v6, %v2373_v30  ;;  %v587_v8 = vpop.f32.mrb[47].mxu0  ;;  %1063 = vmatmul.mubr.bf16.gmra.mrb[28].mxu1 %v714_v63  ;;  %v674_v10 = vmax.f32 %v582_v2, 0.0 }
 0x14b   : > { %v588_v9 = vadd.f32 %v587_v8, %v2376_v4  ;;  %v675_v12 = vmax.f32 %v584_v5, 0.0 }
 0x14c   : > { %v676_v11 = vmax.f32 %v586_v7, 0.0 }
 0x14d   : > { %v677_v13 = vmax.f32 %v588_v9, 0.0 }
 0x14e   : > { %v716_v14 = vpack.c.bf16 %v676_v11, %v674_v10 }
 0x14f   : > { %v717_v15 = vpack.c.bf16 %v677_v13, %v675_v12  ;;  %v591_v16 = vpop.f32.mrb[48].mxu0  ;;  %v758_v12 = vld [vmem:[%s2832_s4] sm:$0x3] }
 0x150   : > { %v592_v17 = vadd.f32 %v591_v16, %v2373_v30  ;;  %v593_v18 = vpop.f32.mrb[49].mxu0  ;;  %v2446_v13 = vrot.slane %v758_v12, %v2365_v27 }
 0x151   : > { %v594_v19 = vadd.f32 %v593_v18, %v2376_v4  ;;  %v595_v20 = vpop.f32.mrb[50].mxu0  ;;  %1072 = vmatprep.mubr.bf16.mxu1 %v717_v15 }
 0x152   : > { %v596_v21 = vadd.f32 %v595_v20, %v2373_v30  ;;  %v597_v22 = vpop.f32.mrb[51].mxu0  ;;  %1073 = vmatmul.mubr.bf16.gmra.mrb[32].mxu1 %v716_v14  ;;  %v678_v24 = vmax.f32 %v592_v17, 0.0 }
 0x153   : > { %v598_v23 = vadd.f32 %v597_v22, %v2376_v4  ;;  %v679_v26 = vmax.f32 %v594_v19, 0.0 }
 0x154   : > { %v680_v25 = vmax.f32 %v596_v21, 0.0 }
 0x155   : > { %v681_v28 = vmax.f32 %v598_v23, 0.0 }
 0x156   : > { %v718_v31 = vpack.c.bf16 %v680_v25, %v678_v24 }
 0x157   : > { %v719_v32 = vpack.c.bf16 %v681_v28, %v679_v26  ;;  %v601_v33 = vpop.f32.mrb[52].mxu0 }
 0x158   : > { %v602_v34 = vadd.f32 %v601_v33, %v2373_v30  ;;  %v603_v35 = vpop.f32.mrb[53].mxu0 }
 0x159   : > { %v604_v36 = vadd.f32 %v603_v35, %v2376_v4  ;;  %v605_v37 = vpop.f32.mrb[54].mxu0  ;;  %1082 = vmatprep.mubr.bf16.mxu1 %v719_v32 }
 0x15a   : > { %v606_v38 = vadd.f32 %v605_v37, %v2373_v30  ;;  %v607_v39 = vpop.f32.mrb[55].mxu0  ;;  %1083 = vmatmul.mubr.bf16.gmra.mrb[36].mxu1 %v718_v31  ;;  %v682_v41 = vmax.f32 %v602_v34, 0.0 }
 0x15b   : > { %v608_v40 = vadd.f32 %v607_v39, %v2376_v4  ;;  %v683_v43 = vmax.f32 %v604_v36, 0.0 }
 0x15c   : > { %v684_v42 = vmax.f32 %v606_v38, 0.0 }
 0x15d   : > { %v685_v44 = vmax.f32 %v608_v40, 0.0 }
 0x15e   : > { %v720_v45 = vpack.c.bf16 %v684_v42, %v682_v41 }
 0x15f   : > { %v721_v46 = vpack.c.bf16 %v685_v44, %v683_v43  ;;  %v611_v47 = vpop.f32.mrb[56].mxu0 }
 0x160   : > { %v612_v48 = vadd.f32 %v611_v47, %v2373_v30  ;;  %v613_v49 = vpop.f32.mrb[57].mxu0 }
 0x161   : > { %v614_v50 = vadd.f32 %v613_v49, %v2376_v4  ;;  %v615_v51 = vpop.f32.mrb[58].mxu0  ;;  %1092 = vmatprep.mubr.bf16.mxu1 %v721_v46 }
 0x162   : > { %v616_v52 = vadd.f32 %v615_v51, %v2373_v30  ;;  %v617_v53 = vpop.f32.mrb[59].mxu0  ;;  %1093 = vmatmul.mubr.bf16.gmra.mrb[40].mxu1 %v720_v45  ;;  %v686_v55 = vmax.f32 %v612_v48, 0.0 }
 0x163   : > { %v618_v54 = vadd.f32 %v617_v53, %v2376_v4  ;;  %v687_v57 = vmax.f32 %v614_v50, 0.0 }
 0x164   : > { %v688_v56 = vmax.f32 %v616_v52, 0.0 }
 0x165   : > { %v689_v58 = vmax.f32 %v618_v54, 0.0 }
 0x166   : > { %v722_v59 = vpack.c.bf16 %v688_v56, %v686_v55 }
 0x167   : > { %v723_v60 = vpack.c.bf16 %v689_v58, %v687_v57  ;;  %v621_v61 = vpop.f32.mrb[60].mxu0 }
 0x168   : > { %v622_v62 = vadd.f32 %v621_v61, %v2373_v30  ;;  %v623_v63 = vpop.f32.mrb[61].mxu0 }
 0x169   : > { %v624_v0 = vadd.f32 %v623_v63, %v2376_v4  ;;  %v625_v1 = vpop.f32.mrb[62].mxu0  ;;  %1102 = vmatprep.mubr.bf16.mxu1 %v723_v60 }
 0x16a   : > { %v626_v2 = vadd.f32 %v625_v1, %v2373_v30  ;;  %v627_v3 = vpop.f32.mrb[63].mxu0  ;;  %1103 = vmatmul.mubr.bf16.gmra.mrb[44].mxu1 %v722_v59  ;;  %v690_v6 = vmax.f32 %v622_v62, 0.0  ;;  %v2449_v30 = vrot.slane %v758_v12, %v2370_v29 }
 0x16b   : > { %v628_v5 = vadd.f32 %v627_v3, %v2376_v4  ;;  %v691_v8 = vmax.f32 %v624_v0, 0.0  ;;  %v1187_v4 = vld [vmem:[%s2833_s5] sm:$0x3] }
 0x16c   : > { %v692_v7 = vmax.f32 %v626_v2, 0.0  ;;  %v2456_v17 = vrot.slane %v1187_v4, %v2365_v27  ;;  %v2460_v20 = vrot.slane %v1187_v4, %v2370_v29 }
 0x16d   : > { %v693_v9 = vmax.f32 %v628_v5, 0.0 }
 0x16e   : > { %v724_v10 = vpack.c.bf16 %v692_v7, %v690_v6 }
 0x16f   : > { %v725_v11 = vpack.c.bf16 %v693_v9, %v691_v8 }
 0x171   : > { %1112 = vmatprep.mubr.bf16.mxu1 %v725_v11 }
 0x172   : > { %1113 = vmatmul.mubr.bf16.gmra.mrb[48].mxu1 %v724_v10 }
 0x1cd   : > { %v964_v14 = vpop.f32.mrb[64].mxu0 }
 0x1ce   : > { %v965_v15 = vadd.f32 %v964_v14, %v2446_v13  ;;  %v966_v16 = vpop.f32.mrb[65].mxu0 }
 0x1cf   : > { %v967_v18 = vadd.f32 %v966_v16, %v2449_v30  ;;  %v968_v19 = vpop.f32.mrb[66].mxu0 }
 0x1d0   : > { %v1123_v21 = vmax.f32 %v965_v15, 0.0  ;;  %v969_v22 = vadd.f32 %v968_v19, %v2446_v13  ;;  %v970_v23 = vpop.f32.mrb[67].mxu0 }
 0x1d1   : > { %v1124_v24 = vmax.f32 %v967_v18, 0.0  ;;  %v971_v25 = vadd.f32 %v970_v23, %v2449_v30 }
 0x1d2   : > { %v1125_v26 = vmax.f32 %v969_v22, 0.0  ;;  %v1199_v28 = vmul.f32 %v2456_v17, %v1123_v21 }
 0x1d3   : > { %v1126_v31 = vmax.f32 %v971_v25, 0.0  ;;  %v1200_v27 = vmul.f32 %v2460_v20, %v1124_v24 }
 0x1d4   : > { %v1201_v32 = vmul.f32 %v2456_v17, %v1125_v26 }
 0x1d5   : > { %v1202_v33 = vmul.f32 %v2460_v20, %v1126_v31  ;;  %v974_v34 = vpop.f32.mrb[68].mxu0  ;;  %v1263_v29 = vadd.f32 %v1200_v27, %v1199_v28 }
 0x1d6   : > { %v975_v35 = vadd.f32 %v974_v34, %v2446_v13  ;;  %v976_v36 = vpop.f32.mrb[69].mxu0 }
 0x1d7   : > { %v977_v37 = vadd.f32 %v976_v36, %v2449_v30  ;;  %v978_v38 = vpop.f32.mrb[70].mxu0  ;;  %1264 = vadd.xlane.f32.xlu0 %v1263_v29  ;;  %v1266_v39 = vadd.f32 %v1202_v33, %v1201_v32 }
 0x1d8   : > { %v1127_v40 = vmax.f32 %v975_v35, 0.0  ;;  %v979_v41 = vadd.f32 %v978_v38, %v2446_v13  ;;  %v980_v42 = vpop.f32.mrb[71].mxu0 }
 0x1d9   : > { %v1128_v43 = vmax.f32 %v977_v37, 0.0  ;;  %v981_v44 = vadd.f32 %v980_v42, %v2449_v30 }
 0x1da   : > { %v1129_v45 = vmax.f32 %v979_v41, 0.0  ;;  %v1203_v46 = vmul.f32 %v2456_v17, %v1127_v40 }
 0x1db   : > { %v1130_v47 = vmax.f32 %v981_v44, 0.0  ;;  %1267 = vadd.xlane.f32.xlu0 %v1266_v39  ;;  %v1204_v48 = vmul.f32 %v2460_v20, %v1128_v43 }
 0x1dc   : > { %v1205_v49 = vmul.f32 %v2456_v17, %v1129_v45 }
 0x1dd   : > { %v1206_v50 = vmul.f32 %v2460_v20, %v1130_v47  ;;  %v984_v51 = vpop.f32.mrb[72].mxu0  ;;  %v1269_v52 = vadd.f32 %v1204_v48, %v1203_v46 }
 0x1de   : > { %v985_v53 = vadd.f32 %v984_v51, %v2446_v13  ;;  %v986_v54 = vpop.f32.mrb[73].mxu0 }
 0x1df   : > { %v987_v55 = vadd.f32 %v986_v54, %v2449_v30  ;;  %v988_v56 = vpop.f32.mrb[74].mxu0  ;;  %1270 = vadd.xlane.f32.xlu1 %v1269_v52  ;;  %v1272_v57 = vadd.f32 %v1206_v50, %v1205_v49 }
 0x1e0   : > { %v1131_v58 = vmax.f32 %v985_v53, 0.0  ;;  %v989_v59 = vadd.f32 %v988_v56, %v2446_v13  ;;  %v990_v60 = vpop.f32.mrb[75].mxu0 }
 0x1e1   : > { %v1132_v61 = vmax.f32 %v987_v55, 0.0  ;;  %v991_v62 = vadd.f32 %v990_v60, %v2449_v30 }
 0x1e2   : > { %v1207_v63 = vmul.f32 %v2456_v17, %v1131_v58  ;;  %v1133_v0 = vmax.f32 %v989_v59, 0.0 }
 0x1e3   : > { %v1208_v1 = vmul.f32 %v2460_v20, %v1132_v61  ;;  %v1134_v2 = vmax.f32 %v991_v62, 0.0  ;;  %1273 = vadd.xlane.f32.xlu1 %v1272_v57 }
 0x1e4   : > { %v1209_v3 = vmul.f32 %v2456_v17, %v1133_v0 }
 0x1e5   : > { %v1210_v5 = vmul.f32 %v2460_v20, %v1134_v2  ;;  %v994_v6 = vpop.f32.mrb[0].mxu1  ;;  %v1275_v7 = vadd.f32 %v1208_v1, %v1207_v63 }
 0x1e6   : > { %v995_v8 = vadd.f32 %v994_v6, %v2446_v13  ;;  %v996_v9 = vpop.f32.mrb[1].mxu1 }
 0x1e7   : > { %v997_v10 = vadd.f32 %v996_v9, %v2449_v30  ;;  %v998_v11 = vpop.f32.mrb[2].mxu1  ;;  %1276 = vadd.xlane.f32.xlu0 %v1275_v7  ;;  %v1278_v12 = vadd.f32 %v1210_v5, %v1209_v3 }
 0x1e8   : > { %v1135_v4 = vmax.f32 %v995_v8, 0.0  ;;  %v999_v14 = vadd.f32 %v998_v11, %v2446_v13  ;;  %v1000_v15 = vpop.f32.mrb[3].mxu1 }
 0x1e9   : > { %v1136_v16 = vmax.f32 %v997_v10, 0.0  ;;  %v1001_v18 = vadd.f32 %v1000_v15, %v2449_v30  ;;  %1279 = vadd.xlane.f32.xlu1 %v1278_v12 }
 0x1ea   : > { %v1211_v19 = vmul.f32 %v2456_v17, %v1135_v4  ;;  %v1137_v21 = vmax.f32 %v999_v14, 0.0 }
 0x1eb   : > { %v1212_v22 = vmul.f32 %v2460_v20, %v1136_v16  ;;  %v1138_v23 = vmax.f32 %v1001_v18, 0.0 }
 0x1ec   : > { %v1213_v24 = vmul.f32 %v2456_v17, %v1137_v21 }
 0x1ed   : > { %v1214_v25 = vmul.f32 %v2460_v20, %v1138_v23  ;;  %v1004_v26 = vpop.f32.mrb[4].mxu1  ;;  %v1281_v28 = vadd.f32 %v1212_v22, %v1211_v19 }
 0x1ee   : > { %v1005_v31 = vadd.f32 %v1004_v26, %v2446_v13  ;;  %v1006_v27 = vpop.f32.mrb[5].mxu1 }
 0x1ef   : > { %v1007_v32 = vadd.f32 %v1006_v27, %v2449_v30  ;;  %v1008_v33 = vpop.f32.mrb[6].mxu1  ;;  %1282 = vadd.xlane.f32.xlu0 %v1281_v28  ;;  %v1284_v34 = vadd.f32 %v1214_v25, %v1213_v24 }
 0x1f0   : > { %v1139_v29 = vmax.f32 %v1005_v31, 0.0  ;;  %v1009_v35 = vadd.f32 %v1008_v33, %v2446_v13  ;;  %v1010_v36 = vpop.f32.mrb[7].mxu1 }
 0x1f1   : > { %v1140_v37 = vmax.f32 %v1007_v32, 0.0  ;;  %v1011_v38 = vadd.f32 %v1010_v36, %v2449_v30  ;;  %1285 = vadd.xlane.f32.xlu1 %v1284_v34 }
 0x1f2   : > { %v1215_v39 = vmul.f32 %v2456_v17, %v1139_v29  ;;  %v1141_v40 = vmax.f32 %v1009_v35, 0.0 }
 0x1f3   : > { %v1216_v41 = vmul.f32 %v2460_v20, %v1140_v37  ;;  %v1142_v42 = vmax.f32 %v1011_v38, 0.0 }
 0x1f4   : > { %v1217_v43 = vmul.f32 %v2456_v17, %v1141_v40 }
 0x1f5   : > { %v1218_v44 = vmul.f32 %v2460_v20, %v1142_v42  ;;  %v1014_v45 = vpop.f32.mrb[8].mxu1  ;;  %v1287_v46 = vadd.f32 %v1216_v41, %v1215_v39 }
 0x1f6   : > { %v1015_v47 = vadd.f32 %v1014_v45, %v2446_v13  ;;  %v1016_v48 = vpop.f32.mrb[9].mxu1 }
 0x1f7   : > { %v1017_v49 = vadd.f32 %v1016_v48, %v2449_v30  ;;  %v1018_v50 = vpop.f32.mrb[10].mxu1  ;;  %1288 = vadd.xlane.f32.xlu0 %v1287_v46  ;;  %v1290_v51 = vadd.f32 %v1218_v44, %v1217_v43 }
 0x1f8   : > { %v1143_v52 = vmax.f32 %v1015_v47, 0.0  ;;  %v1019_v53 = vadd.f32 %v1018_v50, %v2446_v13  ;;  %v1020_v54 = vpop.f32.mrb[11].mxu1 }
 0x1f9   : > { %v1144_v55 = vmax.f32 %v1017_v49, 0.0  ;;  %v1021_v56 = vadd.f32 %v1020_v54, %v2449_v30  ;;  %1291 = vadd.xlane.f32.xlu1 %v1290_v51 }
 0x1fa   : > { %v1219_v57 = vmul.f32 %v2456_v17, %v1143_v52  ;;  %v1145_v58 = vmax.f32 %v1019_v53, 0.0 }
 0x1fb   : > { %v1220_v59 = vmul.f32 %v2460_v20, %v1144_v55  ;;  %v1146_v60 = vmax.f32 %v1021_v56, 0.0 }
 0x1fc   : > { %v1221_v61 = vmul.f32 %v2456_v17, %v1145_v58 }
 0x1fd   : > { %v1222_v62 = vmul.f32 %v2460_v20, %v1146_v60  ;;  %v1024_v63 = vpop.f32.mrb[12].mxu1  ;;  %v1293_v0 = vadd.f32 %v1220_v59, %v1219_v57 }
 0x1fe   : > { %v1025_v1 = vadd.f32 %v1024_v63, %v2446_v13  ;;  %v1026_v2 = vpop.f32.mrb[13].mxu1 }
 0x1ff   : > { %v1027_v3 = vadd.f32 %v1026_v2, %v2449_v30  ;;  %v1028_v5 = vpop.f32.mrb[14].mxu1  ;;  %1294 = vadd.xlane.f32.xlu0 %v1293_v0  ;;  %v1296_v6 = vadd.f32 %v1222_v62, %v1221_v61 }
 0x200   : > { %v1147_v7 = vmax.f32 %v1025_v1, 0.0  ;;  %v1029_v8 = vadd.f32 %v1028_v5, %v2446_v13  ;;  %v1030_v9 = vpop.f32.mrb[15].mxu1 }
 0x201   : > { %v1148_v10 = vmax.f32 %v1027_v3, 0.0  ;;  %v1031_v11 = vadd.f32 %v1030_v9, %v2449_v30  ;;  %1297 = vadd.xlane.f32.xlu1 %v1296_v6 }
 0x202   : > { %v1223_v12 = vmul.f32 %v2456_v17, %v1147_v7  ;;  %v1149_v4 = vmax.f32 %v1029_v8, 0.0 }
 0x203   : > { %v1224_v14 = vmul.f32 %v2460_v20, %v1148_v10  ;;  %v1150_v15 = vmax.f32 %v1031_v11, 0.0 }
 0x204   : > { %v1225_v16 = vmul.f32 %v2456_v17, %v1149_v4 }
 0x205   : > { %v1226_v18 = vmul.f32 %v2460_v20, %v1150_v15  ;;  %v1034_v19 = vpop.f32.mrb[16].mxu1  ;;  %v1299_v21 = vadd.f32 %v1224_v14, %v1223_v12 }
 0x206   : > { %v1035_v22 = vadd.f32 %v1034_v19, %v2446_v13  ;;  %v1036_v23 = vpop.f32.mrb[17].mxu1 }
 0x207   : > { %v1037_v24 = vadd.f32 %v1036_v23, %v2449_v30  ;;  %v1038_v25 = vpop.f32.mrb[18].mxu1  ;;  %1300 = vadd.xlane.f32.xlu0 %v1299_v21  ;;  %v1302_v26 = vadd.f32 %v1226_v18, %v1225_v16 }
 0x208   : > { %v1151_v28 = vmax.f32 %v1035_v22, 0.0  ;;  %v1039_v31 = vadd.f32 %v1038_v25, %v2446_v13  ;;  %v1040_v27 = vpop.f32.mrb[19].mxu1 }
 0x209   : > { %v1152_v32 = vmax.f32 %v1037_v24, 0.0  ;;  %v1041_v33 = vadd.f32 %v1040_v27, %v2449_v30  ;;  %1303 = vadd.xlane.f32.xlu1 %v1302_v26 }
 0x20a   : > { %v1227_v34 = vmul.f32 %v2456_v17, %v1151_v28  ;;  %v1153_v29 = vmax.f32 %v1039_v31, 0.0 }
 0x20b   : > { %v1228_v35 = vmul.f32 %v2460_v20, %v1152_v32  ;;  %v1154_v36 = vmax.f32 %v1041_v33, 0.0 }
 0x20c   : > { %v1229_v37 = vmul.f32 %v2456_v17, %v1153_v29 }
 0x20d   : > { %v1230_v38 = vmul.f32 %v2460_v20, %v1154_v36  ;;  %v1044_v39 = vpop.f32.mrb[20].mxu1  ;;  %v1305_v40 = vadd.f32 %v1228_v35, %v1227_v34 }
 0x20e   : > { %v1045_v41 = vadd.f32 %v1044_v39, %v2446_v13  ;;  %v1046_v42 = vpop.f32.mrb[21].mxu1 }
 0x20f   : > { %v1047_v43 = vadd.f32 %v1046_v42, %v2449_v30  ;;  %v1048_v44 = vpop.f32.mrb[22].mxu1  ;;  %1306 = vadd.xlane.f32.xlu0 %v1305_v40  ;;  %v1308_v45 = vadd.f32 %v1230_v38, %v1229_v37 }
 0x210   : > { %v1155_v46 = vmax.f32 %v1045_v41, 0.0  ;;  %v1049_v47 = vadd.f32 %v1048_v44, %v2446_v13  ;;  %v1050_v48 = vpop.f32.mrb[23].mxu1 }
 0x211   : > { %v1156_v49 = vmax.f32 %v1047_v43, 0.0  ;;  %v1051_v50 = vadd.f32 %v1050_v48, %v2449_v30  ;;  %1309 = vadd.xlane.f32.xlu1 %v1308_v45 }
 0x212   : > { %v1231_v51 = vmul.f32 %v2456_v17, %v1155_v46  ;;  %v1157_v52 = vmax.f32 %v1049_v47, 0.0 }
 0x213   : > { %v1232_v53 = vmul.f32 %v2460_v20, %v1156_v49  ;;  %v1158_v54 = vmax.f32 %v1051_v50, 0.0 }
 0x214   : > { %v1233_v55 = vmul.f32 %v2456_v17, %v1157_v52 }
 0x215   : > { %v1234_v56 = vmul.f32 %v2460_v20, %v1158_v54  ;;  %v1054_v57 = vpop.f32.mrb[24].mxu1  ;;  %v1311_v58 = vadd.f32 %v1232_v53, %v1231_v51 }
 0x216   : > { %v1055_v59 = vadd.f32 %v1054_v57, %v2446_v13  ;;  %v1056_v60 = vpop.f32.mrb[25].mxu1 }
 0x217   : > { %v1057_v61 = vadd.f32 %v1056_v60, %v2449_v30  ;;  %v1058_v62 = vpop.f32.mrb[26].mxu1  ;;  %1312 = vadd.xlane.f32.xlu0 %v1311_v58  ;;  %v1314_v63 = vadd.f32 %v1234_v56, %v1233_v55 }
 0x218   : > { %v1159_v0 = vmax.f32 %v1055_v59, 0.0  ;;  %v1059_v1 = vadd.f32 %v1058_v62, %v2446_v13  ;;  %v1060_v2 = vpop.f32.mrb[27].mxu1 }
 0x219   : > { %v1160_v3 = vmax.f32 %v1057_v61, 0.0  ;;  %v1061_v5 = vadd.f32 %v1060_v2, %v2449_v30  ;;  %1315 = vadd.xlane.f32.xlu1 %v1314_v63 }
 0x21a   : > { %v1235_v6 = vmul.f32 %v2456_v17, %v1159_v0  ;;  %v1161_v7 = vmax.f32 %v1059_v1, 0.0 }
 0x21b   : > { %v1236_v8 = vmul.f32 %v2460_v20, %v1160_v3  ;;  %v1162_v9 = vmax.f32 %v1061_v5, 0.0 }
 0x21c   : > { %v1237_v10 = vmul.f32 %v2456_v17, %v1161_v7 }
 0x21d   : > { %v1238_v11 = vmul.f32 %v2460_v20, %v1162_v9  ;;  %v1064_v12 = vpop.f32.mrb[28].mxu1  ;;  %v1317_v4 = vadd.f32 %v1236_v8, %v1235_v6 }
 0x21e   : > { %v1065_v14 = vadd.f32 %v1064_v12, %v2446_v13  ;;  %v1066_v15 = vpop.f32.mrb[29].mxu1 }
 0x21f   : > { %v1067_v16 = vadd.f32 %v1066_v15, %v2449_v30  ;;  %v1068_v18 = vpop.f32.mrb[30].mxu1  ;;  %1318 = vadd.xlane.f32.xlu0 %v1317_v4  ;;  %v1320_v19 = vadd.f32 %v1238_v11, %v1237_v10 }
 0x220   : > { %v1163_v21 = vmax.f32 %v1065_v14, 0.0  ;;  %v1069_v22 = vadd.f32 %v1068_v18, %v2446_v13  ;;  %v1070_v23 = vpop.f32.mrb[31].mxu1 }
 0x221   : > { %v1164_v24 = vmax.f32 %v1067_v16, 0.0  ;;  %v1071_v25 = vadd.f32 %v1070_v23, %v2449_v30  ;;  %1321 = vadd.xlane.f32.xlu1 %v1320_v19 }
 0x222   : > { %v1239_v26 = vmul.f32 %v2456_v17, %v1163_v21  ;;  %v1165_v28 = vmax.f32 %v1069_v22, 0.0 }
 0x223   : > { %v1240_v31 = vmul.f32 %v2460_v20, %v1164_v24  ;;  %v1166_v27 = vmax.f32 %v1071_v25, 0.0 }
 0x224   : > { %v1241_v32 = vmul.f32 %v2456_v17, %v1165_v28 }
 0x225   : > { %v1242_v33 = vmul.f32 %v2460_v20, %v1166_v27  ;;  %v1074_v34 = vpop.f32.mrb[32].mxu1  ;;  %v1323_v29 = vadd.f32 %v1240_v31, %v1239_v26 }
 0x226   : > { %v1075_v35 = vadd.f32 %v1074_v34, %v2446_v13  ;;  %v1076_v36 = vpop.f32.mrb[33].mxu1 }
 0x227   : > { %v1077_v37 = vadd.f32 %v1076_v36, %v2449_v30  ;;  %v1078_v38 = vpop.f32.mrb[34].mxu1  ;;  %1324 = vadd.xlane.f32.xlu0 %v1323_v29  ;;  %v1326_v39 = vadd.f32 %v1242_v33, %v1241_v32 }
 0x228   : > { %v1167_v40 = vmax.f32 %v1075_v35, 0.0  ;;  %v1079_v41 = vadd.f32 %v1078_v38, %v2446_v13  ;;  %v1080_v42 = vpop.f32.mrb[35].mxu1 }
 0x229   : > { %v1168_v43 = vmax.f32 %v1077_v37, 0.0  ;;  %v1081_v44 = vadd.f32 %v1080_v42, %v2449_v30  ;;  %1327 = vadd.xlane.f32.xlu1 %v1326_v39 }
 0x22a   : > { %v1243_v45 = vmul.f32 %v2456_v17, %v1167_v40  ;;  %v1169_v46 = vmax.f32 %v1079_v41, 0.0 }
 0x22b   : > { %v1244_v47 = vmul.f32 %v2460_v20, %v1168_v43  ;;  %v1170_v48 = vmax.f32 %v1081_v44, 0.0 }
 0x22c   : > { %v1245_v49 = vmul.f32 %v2456_v17, %v1169_v46 }
 0x22d   : > { %v1246_v50 = vmul.f32 %v2460_v20, %v1170_v48  ;;  %v1084_v51 = vpop.f32.mrb[36].mxu1  ;;  %v1329_v52 = vadd.f32 %v1244_v47, %v1243_v45 }
 0x22e   : > { %v1085_v53 = vadd.f32 %v1084_v51, %v2446_v13  ;;  %v1086_v54 = vpop.f32.mrb[37].mxu1 }
 0x22f   : > { %v1087_v55 = vadd.f32 %v1086_v54, %v2449_v30  ;;  %v1088_v56 = vpop.f32.mrb[38].mxu1  ;;  %1330 = vadd.xlane.f32.xlu0 %v1329_v52  ;;  %v1332_v57 = vadd.f32 %v1246_v50, %v1245_v49 }
 0x230   : > { %v1171_v58 = vmax.f32 %v1085_v53, 0.0  ;;  %v1089_v59 = vadd.f32 %v1088_v56, %v2446_v13  ;;  %v1090_v60 = vpop.f32.mrb[39].mxu1 }
 0x231   : > { %v1172_v61 = vmax.f32 %v1087_v55, 0.0  ;;  %v1091_v62 = vadd.f32 %v1090_v60, %v2449_v30  ;;  %1333 = vadd.xlane.f32.xlu1 %v1332_v57 }
 0x232   : > { %v1247_v63 = vmul.f32 %v2456_v17, %v1171_v58  ;;  %v1173_v0 = vmax.f32 %v1089_v59, 0.0 }
 0x233   : > { %v1248_v1 = vmul.f32 %v2460_v20, %v1172_v61  ;;  %v1174_v2 = vmax.f32 %v1091_v62, 0.0 }
 0x234   : > { %v1249_v3 = vmul.f32 %v2456_v17, %v1173_v0 }
 0x235   : > { %v1250_v5 = vmul.f32 %v2460_v20, %v1174_v2  ;;  %v1094_v6 = vpop.f32.mrb[40].mxu1  ;;  %v1335_v7 = vadd.f32 %v1248_v1, %v1247_v63 }
 0x236   : > { %v1095_v8 = vadd.f32 %v1094_v6, %v2446_v13  ;;  %v1096_v9 = vpop.f32.mrb[41].mxu1 }
 0x237   : > { %v1097_v10 = vadd.f32 %v1096_v9, %v2449_v30  ;;  %v1098_v11 = vpop.f32.mrb[42].mxu1  ;;  %1336 = vadd.xlane.f32.xlu0 %v1335_v7  ;;  %v1338_v12 = vadd.f32 %v1250_v5, %v1249_v3 }
 0x238   : > { %v1175_v4 = vmax.f32 %v1095_v8, 0.0  ;;  %v1099_v14 = vadd.f32 %v1098_v11, %v2446_v13  ;;  %v1100_v15 = vpop.f32.mrb[43].mxu1 }
 0x239   : > { %v1176_v16 = vmax.f32 %v1097_v10, 0.0  ;;  %v1101_v18 = vadd.f32 %v1100_v15, %v2449_v30  ;;  %1339 = vadd.xlane.f32.xlu1 %v1338_v12 }
 0x23a   : > { %v1251_v19 = vmul.f32 %v2456_v17, %v1175_v4  ;;  %v1177_v21 = vmax.f32 %v1099_v14, 0.0 }
 0x23b   : > { %v1252_v22 = vmul.f32 %v2460_v20, %v1176_v16  ;;  %v1178_v23 = vmax.f32 %v1101_v18, 0.0 }
 0x23c   : > { %v1253_v24 = vmul.f32 %v2456_v17, %v1177_v21 }
 0x23d   : > { %v1254_v25 = vmul.f32 %v2460_v20, %v1178_v23  ;;  %v1104_v26 = vpop.f32.mrb[44].mxu1  ;;  %v1341_v28 = vadd.f32 %v1252_v22, %v1251_v19 }
 0x23e   : > { %v1105_v31 = vadd.f32 %v1104_v26, %v2446_v13  ;;  %v1106_v27 = vpop.f32.mrb[45].mxu1 }
 0x23f   : > { %v1107_v32 = vadd.f32 %v1106_v27, %v2449_v30  ;;  %v1108_v33 = vpop.f32.mrb[46].mxu1  ;;  %1342 = vadd.xlane.f32.xlu0 %v1341_v28  ;;  %v1344_v34 = vadd.f32 %v1254_v25, %v1253_v24 }
 0x240   : > { %v1179_v29 = vmax.f32 %v1105_v31, 0.0  ;;  %v1109_v35 = vadd.f32 %v1108_v33, %v2446_v13  ;;  %v1110_v36 = vpop.f32.mrb[47].mxu1 }
 0x241   : > { %v1180_v37 = vmax.f32 %v1107_v32, 0.0  ;;  %v1111_v38 = vadd.f32 %v1110_v36, %v2449_v30  ;;  %1345 = vadd.xlane.f32.xlu1 %v1344_v34 }
 0x242   : > { %v1255_v39 = vmul.f32 %v2456_v17, %v1179_v29  ;;  %v1181_v40 = vmax.f32 %v1109_v35, 0.0 }
 0x243   : > { %v1256_v41 = vmul.f32 %v2460_v20, %v1180_v37  ;;  %v1182_v42 = vmax.f32 %v1111_v38, 0.0 }
 0x244   : > { %v1257_v43 = vmul.f32 %v2456_v17, %v1181_v40 }
 0x245   : > { %v1258_v44 = vmul.f32 %v2460_v20, %v1182_v42  ;;  %v1114_v45 = vpop.f32.mrb[48].mxu1  ;;  %v1347_v46 = vadd.f32 %v1256_v41, %v1255_v39 }
 0x246   : > { %v1115_v47 = vadd.f32 %v1114_v45, %v2446_v13  ;;  %v1116_v48 = vpop.f32.mrb[49].mxu1 }
 0x247   : > { %v1117_v49 = vadd.f32 %v1116_v48, %v2449_v30  ;;  %v1118_v50 = vpop.f32.mrb[50].mxu1  ;;  %1348 = vadd.xlane.f32.xlu0 %v1347_v46  ;;  %v1350_v51 = vadd.f32 %v1258_v44, %v1257_v43 }
 0x248   : > { %v1183_v52 = vmax.f32 %v1115_v47, 0.0  ;;  %v1119_v53 = vadd.f32 %v1118_v50, %v2446_v13  ;;  %v1120_v54 = vpop.f32.mrb[51].mxu1  ;;  %v2589_v13 = vld [vmem:[#allocation2] ss:$0 sm:$0xff] }
 0x249   : > { %v1184_v55 = vmax.f32 %v1117_v49, 0.0  ;;  %v1121_v56 = vadd.f32 %v1120_v54, %v2449_v30  ;;  %1351 = vadd.xlane.f32.xlu1 %v1350_v51 }
 0x24a   : > { %v1259_v57 = vmul.f32 %v2456_v17, %v1183_v52  ;;  %v1185_v58 = vmax.f32 %v1119_v53, 0.0 }
 0x24b   : > { %v1260_v59 = vmul.f32 %v2460_v20, %v1184_v55  ;;  %v1186_v60 = vmax.f32 %v1121_v56, 0.0 }
 0x24c   : > { %v1261_v61 = vmul.f32 %v2456_v17, %v1185_v58 }
 0x24d   : > { %v1262_v62 = vmul.f32 %v2460_v20, %v1186_v60  ;;  %v1353_v63 = vadd.f32 %v1260_v59, %v1259_v57 }
 0x24f   : > { %1354 = vadd.xlane.f32.xlu0 %v1353_v63  ;;  %v1356_v0 = vadd.f32 %v1262_v62, %v1261_v61 }
 0x251   : > { %1357 = vadd.xlane.f32.xlu1 %v1356_v0 }
 0x264   : > { %v1265_v30 = vpop.xlane.xlu0 %1264 }
 0x265   : > { %v1366_v1 = vadd.f32 %v2589_v13, %v1265_v30 }
 0x267   : > { %1399 = vst.msk [vmem:[%s2592_s12] sm:$0xff] %vm1398_vm2, %v1366_v1 }
 0x268   : > { %v1268_v17 = vpop.xlane.xlu0 %1267 }
 0x269   : > { %v1367_v20 = vadd.f32 %v2589_v13, %v1268_v17 }
 0x26b   : > { %1400 = vst.msk [vmem:[%s2592_s12 + $0x8] sm:$0xff] %vm1398_vm2, %v1367_v20 }
 0x26c   : > { %v1271_v2 = vpop.xlane.xlu1 %1270 }
 0x26d   : > { %v1368_v3 = vadd.f32 %v2589_v13, %v1271_v2 }
 0x26f   : > { %1401 = vst.msk [vmem:[%s2592_s12 + $0x10] sm:$0xff] %vm1398_vm2, %v1368_v3 }
 0x270   : > { %v1274_v5 = vpop.xlane.xlu1 %1273 }
 0x271   : > { %v1369_v6 = vadd.f32 %v2589_v13, %v1274_v5 }
 0x273   : > { %1402 = vst.msk [vmem:[%s2592_s12 + $0x18] sm:$0xff] %vm1398_vm2, %v1369_v6 }
 0x274   : > { %v1277_v7 = vpop.xlane.xlu0 %1276 }
 0x275   : > { %v1370_v8 = vadd.f32 %v2589_v13, %v1277_v7 }
 0x276   : > { %v1280_v9 = vpop.xlane.xlu1 %1279 }
 0x277   : > { %1403 = vst.msk [vmem:[%s2592_s12 + $0x20] sm:$0xff] %vm1398_vm2, %v1370_v8  ;;  %v1371_v10 = vadd.f32 %v2589_v13, %v1280_v9 }
 0x279   : > { %1404 = vst.msk [vmem:[%s2592_s12 + $0x28] sm:$0xff] %vm1398_vm2, %v1371_v10 }
 0x27c   : > { %v1283_v11 = vpop.xlane.xlu0 %1282 }
 0x27d   : > { %v1372_v12 = vadd.f32 %v2589_v13, %v1283_v11 }
 0x27e   : > { %v1286_v4 = vpop.xlane.xlu1 %1285 }
 0x27f   : > { %1405 = vst.msk [vmem:[%s2592_s12 + $0x30] sm:$0xff] %vm1398_vm2, %v1372_v12  ;;  %v1373_v14 = vadd.f32 %v2589_v13, %v1286_v4 }
 0x281   : > { %1406 = vst.msk [vmem:[%s2592_s12 + $0x38] sm:$0xff] %vm1398_vm2, %v1373_v14 }
 0x284   : > { %v1289_v15 = vpop.xlane.xlu0 %1288 }
 0x285   : > { %v1374_v16 = vadd.f32 %v2589_v13, %v1289_v15 }
 0x286   : > { %v1292_v18 = vpop.xlane.xlu1 %1291 }
 0x287   : > { %1407 = vst.msk [vmem:[%s2592_s12 + $0x40] sm:$0xff] %vm1398_vm2, %v1374_v16  ;;  %v1375_v19 = vadd.f32 %v2589_v13, %v1292_v18 }
 0x289   : > { %1408 = vst.msk [vmem:[%s2592_s12 + $0x48] sm:$0xff] %vm1398_vm2, %v1375_v19 }
 0x28c   : > { %v1295_v21 = vpop.xlane.xlu0 %1294 }
 0x28d   : > { %v1376_v22 = vadd.f32 %v2589_v13, %v1295_v21 }
 0x28e   : > { %v1298_v23 = vpop.xlane.xlu1 %1297 }
 0x28f   : > { %1409 = vst.msk [vmem:[%s2592_s12 + $0x50] sm:$0xff] %vm1398_vm2, %v1376_v22  ;;  %v1377_v24 = vadd.f32 %v2589_v13, %v1298_v23 }
 0x291   : > { %1410 = vst.msk [vmem:[%s2592_s12 + $0x58] sm:$0xff] %vm1398_vm2, %v1377_v24 }
 0x294   : > { %v1301_v25 = vpop.xlane.xlu0 %1300 }
 0x295   : > { %v1378_v26 = vadd.f32 %v2589_v13, %v1301_v25 }
 0x296   : > { %v1304_v28 = vpop.xlane.xlu1 %1303 }
 0x297   : > { %1411 = vst.msk [vmem:[%s2592_s12 + $0x60] sm:$0xff] %vm1398_vm2, %v1378_v26  ;;  %v1379_v31 = vadd.f32 %v2589_v13, %v1304_v28 }
 0x299   : > { %1412 = vst.msk [vmem:[%s2592_s12 + $0x68] sm:$0xff] %vm1398_vm2, %v1379_v31 }
 0x29c   : > { %v1307_v27 = vpop.xlane.xlu0 %1306 }
 0x29d   : > { %v1380_v32 = vadd.f32 %v2589_v13, %v1307_v27 }
 0x29e   : > { %v1310_v33 = vpop.xlane.xlu1 %1309 }
 0x29f   : > { %1413 = vst.msk [vmem:[%s2592_s12 + $0x70] sm:$0xff] %vm1398_vm2, %v1380_v32  ;;  %v1381_v34 = vadd.f32 %v2589_v13, %v1310_v33 }
 0x2a1   : > { %1414 = vst.msk [vmem:[%s2592_s12 + $0x78] sm:$0xff] %vm1398_vm2, %v1381_v34 }
 0x2a4   : > { %v1313_v29 = vpop.xlane.xlu0 %1312 }
 0x2a5   : > { %v1382_v35 = vadd.f32 %v2589_v13, %v1313_v29 }
 0x2a6   : > { %v1316_v36 = vpop.xlane.xlu1 %1315 }
 0x2a7   : > { %1415 = vst.msk [vmem:[%s2592_s12 + $0x80] sm:$0xff] %vm1398_vm2, %v1382_v35  ;;  %v1383_v37 = vadd.f32 %v2589_v13, %v1316_v36 }
 0x2a9   : > { %1416 = vst.msk [vmem:[%s2592_s12 + $0x88] sm:$0xff] %vm1398_vm2, %v1383_v37 }
 0x2ac   : > { %v1319_v38 = vpop.xlane.xlu0 %1318 }
 0x2ad   : > { %v1384_v39 = vadd.f32 %v2589_v13, %v1319_v38 }
 0x2ae   : > { %v1322_v40 = vpop.xlane.xlu1 %1321 }
 0x2af   : > { %1417 = vst.msk [vmem:[%s2592_s12 + $0x90] sm:$0xff] %vm1398_vm2, %v1384_v39  ;;  %v1385_v41 = vadd.f32 %v2589_v13, %v1322_v40 }
 0x2b1   : > { %1418 = vst.msk [vmem:[%s2592_s12 + $0x98] sm:$0xff] %vm1398_vm2, %v1385_v41 }
 0x2b4   : > { %v1325_v42 = vpop.xlane.xlu0 %1324 }
 0x2b5   : > { %v1386_v43 = vadd.f32 %v2589_v13, %v1325_v42 }
 0x2b6   : > { %v1328_v44 = vpop.xlane.xlu1 %1327 }
 0x2b7   : > { %1419 = vst.msk [vmem:[%s2592_s12 + $0xa0] sm:$0xff] %vm1398_vm2, %v1386_v43  ;;  %v1387_v45 = vadd.f32 %v2589_v13, %v1328_v44 }
 0x2b9   : > { %1420 = vst.msk [vmem:[%s2592_s12 + $0xa8] sm:$0xff] %vm1398_vm2, %v1387_v45 }
 0x2bc   : > { %v1331_v46 = vpop.xlane.xlu0 %1330 }
 0x2bd   : > { %v1388_v47 = vadd.f32 %v2589_v13, %v1331_v46 }
 0x2be   : > { %v1334_v48 = vpop.xlane.xlu1 %1333 }
 0x2bf   : > { %1421 = vst.msk [vmem:[%s2592_s12 + $0xb0] sm:$0xff] %vm1398_vm2, %v1388_v47  ;;  %v1389_v49 = vadd.f32 %v2589_v13, %v1334_v48 }
 0x2c1   : > { %1422 = vst.msk [vmem:[%s2592_s12 + $0xb8] sm:$0xff] %vm1398_vm2, %v1389_v49 }
 0x2c4   : > { %v1337_v50 = vpop.xlane.xlu0 %1336 }
 0x2c5   : > { %v1390_v51 = vadd.f32 %v2589_v13, %v1337_v50 }
 0x2c6   : > { %v1340_v52 = vpop.xlane.xlu1 %1339 }
 0x2c7   : > { %1423 = vst.msk [vmem:[%s2592_s12 + $0xc0] sm:$0xff] %vm1398_vm2, %v1390_v51  ;;  %v1391_v53 = vadd.f32 %v2589_v13, %v1340_v52 }
 0x2c9   : > { %1424 = vst.msk [vmem:[%s2592_s12 + $0xc8] sm:$0xff] %vm1398_vm2, %v1391_v53 }
 0x2cc   : > { %v1343_v54 = vpop.xlane.xlu0 %1342 }
 0x2cd   : > { %v1392_v55 = vadd.f32 %v2589_v13, %v1343_v54 }
 0x2ce   : > { %v1346_v56 = vpop.xlane.xlu1 %1345 }
 0x2cf   : > { %1425 = vst.msk [vmem:[%s2592_s12 + $0xd0] sm:$0xff] %vm1398_vm2, %v1392_v55  ;;  %v1393_v57 = vadd.f32 %v2589_v13, %v1346_v56 }
 0x2d1   : > { %1426 = vst.msk [vmem:[%s2592_s12 + $0xd8] sm:$0xff] %vm1398_vm2, %v1393_v57 }
 0x2d4   : > { %v1349_v58 = vpop.xlane.xlu0 %1348 }
 0x2d5   : > { %v1394_v59 = vadd.f32 %v2589_v13, %v1349_v58 }
 0x2d6   : > { %v1352_v60 = vpop.xlane.xlu1 %1351 }
 0x2d7   : > { %1427 = vst.msk [vmem:[%s2592_s12 + $0xe0] sm:$0xff] %vm1398_vm2, %v1394_v59  ;;  %v1395_v61 = vadd.f32 %v2589_v13, %v1352_v60 }
 0x2d9   : > { %1428 = vst.msk [vmem:[%s2592_s12 + $0xe8] sm:$0xff] %vm1398_vm2, %v1395_v61 }
 0x2db   : > { %1437 = sbr.rel (!%p2182_p4) target bundleno = 794 (0x31a), region = 52 }
 0x2dc   : > { %v1355_v62 = vpop.xlane.xlu0 %1354 }
 0x2dd   : > { %v1396_v63 = vadd.f32 %v2589_v13, %v1355_v62 }
 0x2de   : > { %v1358_v0 = vpop.xlane.xlu1 %1357 }
 0x2df   : > { %1429 = vst.msk [vmem:[%s2592_s12 + $0xf0] sm:$0xff] %vm1398_vm2, %v1396_v63  ;;  %v1397_v30 = vadd.f32 %v2589_v13, %v1358_v0 }
 0x2e1   : > { %1430 = vst.msk [vmem:[%s2592_s12 + $0xf8] sm:$0xff] %vm1398_vm2, %v1397_v30 }
 0x2e2   : > { %s2846_s26 = smov (!%p1440_p8, %s1439_s26), 32 }
 0x2e3   : > { %s1833_s18 = sshll.u32 %s2846_s26, 7 }
 0x2e4   : > { %p1836_p9 = scmp.eq.s32.totalorder %s1833_s18, 0 }
 0x2e5   : > { %s2702_s19 = sshrl.u32 (!%p1836_p9), %s2846_s26, 5 }
 0x2e6   : > { %1448 = sbr.rel (%p1836_p9) target bundleno = 794 (0x31a), region = 56  ;;  %p1837_p10 = scmp.le.s32.totalorder (!%p1836_p9), %s2702_s19, 0 }
 0x2ed   : > { %1726 = sbr.rel (%p1837_p10) target bundleno = 773 (0x305), region = 132  ;;  %s2837_s6 = smov (!%p1837_p10), %s2696_s16 }
 0x2ee   : > { %s2838_s10 = smov (!%p1837_p10), %s2592_s12  ;;  %s2711_s17 = smov (!%p1837_p10), 0  }
 0x2ef   : > { %s2713_s20 = smov (!%p1837_p10), 0  }
 0x2f4 LB: >> { %v1572_v13 = vld [vmem:[%s2087_s10] sm:$0xff]  ;;  %v1574_v1 = vld [vmem:[%s2087_s10 + $0x8] sm:$0xff]  ;;  %v1576_v17 = vld [vmem:[%s2087_s10 + $0x10] sm:$0xff]  ;;  %s1636_s21 = sadd.s32 1, %s2091_s17  ;;  %s1566_s20 = sadd.s32 1, %s2095_s20   ;;  %s2095_s20 = sphi %s2713_s20, %s1566_s20   ;;  %s2091_s17 = sphi %s2711_s17, %s2841_s17   ;;  %s2087_s10 = sphi %s2838_s10, %s2840_s10   ;;  %s2083_s6 = sphi %s2837_s6, %s2839_s6  }
 0x2f5   : >> { %1573 = vst [vmem:[%s2083_s6] sm:$0xff] %v1572_v13  ;;  %1575 = vst [vmem:[%s2083_s6 + $0x8] sm:$0xff] %v1574_v1  ;;  %v1578_v20 = vld [vmem:[%s2087_s10 + $0x18] sm:$0xff]  ;;  %v1580_v2 = vld [vmem:[%s2087_s10 + $0x20] sm:$0xff]  ;;  %p1637_p11 = scmp.ge.s32.totalorder %s1636_s21, %s2702_s19  ;;  %p1565_p12 = scmp.ge.s32.totalorder %s1566_s20, %s2702_s19 }
 0x2f6   : >> { %1577 = vst [vmem:[%s2083_s6 + $0x10] sm:$0xff] %v1576_v17  ;;  %v1582_v3 = vld [vmem:[%s2087_s10 + $0x28] sm:$0xff]  ;;  %1579 = vst [vmem:[%s2083_s6 + $0x18] sm:$0xff] %v1578_v20  ;;  %v1584_v5 = vld [vmem:[%s2087_s10 + $0x30] sm:$0xff] }
 0x2f7   : >> { %1581 = vst [vmem:[%s2083_s6 + $0x20] sm:$0xff] %v1580_v2  ;;  %1583 = vst [vmem:[%s2083_s6 + $0x28] sm:$0xff] %v1582_v3  ;;  %v1586_v6 = vld [vmem:[%s2087_s10 + $0x38] sm:$0xff]  ;;  %v1588_v7 = vld [vmem:[%s2087_s10 + $0x40] sm:$0xff]  ;;  %s2848_s21 = smov (%p1637_p11, %s1636_s21), 0 }
 0x2f8   : >> { %1585 = vst [vmem:[%s2083_s6 + $0x30] sm:$0xff] %v1584_v5  ;;  %1587 = vst [vmem:[%s2083_s6 + $0x38] sm:$0xff] %v1586_v6  ;;  %v1590_v8 = vld [vmem:[%s2087_s10 + $0x48] sm:$0xff]  ;;  %v1592_v9 = vld [vmem:[%s2087_s10 + $0x50] sm:$0xff]  ;;  %s1838_s22 = sshll.u32 %s2848_s21, 8  ;;  %s2841_s17 = smov %s2848_s21 }
 0x2f9   : >> { %1589 = vst [vmem:[%s2083_s6 + $0x40] sm:$0xff] %v1588_v7  ;;  %v1594_v10 = vld [vmem:[%s2087_s10 + $0x58] sm:$0xff]  ;;  %1591 = vst [vmem:[%s2083_s6 + $0x48] sm:$0xff] %v1590_v8  ;;  %v1596_v11 = vld [vmem:[%s2087_s10 + $0x60] sm:$0xff]  ;;  %s2769_s23 = scalar_lea.vmem %s2592_s12, %s1838_s22 [#allocation3]   ;;  %s1642_s8 = scalar_lea.vmem %s2696_s16, %s1838_s22  }
 0x2fa   : >> { %1593 = vst [vmem:[%s2083_s6 + $0x50] sm:$0xff] %v1592_v9  ;;  %1595 = vst [vmem:[%s2083_s6 + $0x58] sm:$0xff] %v1594_v10  ;;  %v1598_v12 = vld [vmem:[%s2087_s10 + $0x68] sm:$0xff]  ;;  %v1600_v4 = vld [vmem:[%s2087_s10 + $0x70] sm:$0xff] }
 0x2fb   : >> { %1597 = vst [vmem:[%s2083_s6 + $0x60] sm:$0xff] %v1596_v11  ;;  %1599 = vst [vmem:[%s2083_s6 + $0x68] sm:$0xff] %v1598_v12  ;;  %v1602_v14 = vld [vmem:[%s2087_s10 + $0x78] sm:$0xff]  ;;  %v1604_v15 = vld [vmem:[%s2087_s10 + $0x80] sm:$0xff] }
 0x2fc   : >> { %1601 = vst [vmem:[%s2083_s6 + $0x70] sm:$0xff] %v1600_v4  ;;  %v1606_v16 = vld [vmem:[%s2087_s10 + $0x88] sm:$0xff]  ;;  %1603 = vst [vmem:[%s2083_s6 + $0x78] sm:$0xff] %v1602_v14  ;;  %v1608_v18 = vld [vmem:[%s2087_s10 + $0x90] sm:$0xff] }
 0x2fd   : >> { %1605 = vst [vmem:[%s2083_s6 + $0x80] sm:$0xff] %v1604_v15  ;;  %1607 = vst [vmem:[%s2083_s6 + $0x88] sm:$0xff] %v1606_v16  ;;  %v1610_v19 = vld [vmem:[%s2087_s10 + $0x98] sm:$0xff]  ;;  %v1612_v21 = vld [vmem:[%s2087_s10 + $0xa0] sm:$0xff] }
 0x2fe   : >> { %1609 = vst [vmem:[%s2083_s6 + $0x90] sm:$0xff] %v1608_v18  ;;  %1611 = vst [vmem:[%s2083_s6 + $0x98] sm:$0xff] %v1610_v19  ;;  %v1614_v22 = vld [vmem:[%s2087_s10 + $0xa8] sm:$0xff]  ;;  %v1616_v23 = vld [vmem:[%s2087_s10 + $0xb0] sm:$0xff]  ;;  %1568 = sbr.rel (!%p1565_p12) target bundleno = 756 (0x2f4), region = 138 }
 0x2ff   : >> { %1613 = vst [vmem:[%s2083_s6 + $0xa0] sm:$0xff] %v1612_v21  ;;  %v1618_v24 = vld [vmem:[%s2087_s10 + $0xb8] sm:$0xff]  ;;  %1615 = vst [vmem:[%s2083_s6 + $0xa8] sm:$0xff] %v1614_v22  ;;  %v1620_v25 = vld [vmem:[%s2087_s10 + $0xc0] sm:$0xff] }
 0x300   : >> { %1617 = vst [vmem:[%s2083_s6 + $0xb0] sm:$0xff] %v1616_v23  ;;  %1619 = vst [vmem:[%s2083_s6 + $0xb8] sm:$0xff] %v1618_v24  ;;  %v1622_v26 = vld [vmem:[%s2087_s10 + $0xc8] sm:$0xff]  ;;  %v1624_v28 = vld [vmem:[%s2087_s10 + $0xd0] sm:$0xff] }
 0x301   : >> { %1621 = vst [vmem:[%s2083_s6 + $0xc0] sm:$0xff] %v1620_v25  ;;  %1623 = vst [vmem:[%s2083_s6 + $0xc8] sm:$0xff] %v1622_v26  ;;  %v1626_v31 = vld [vmem:[%s2087_s10 + $0xd8] sm:$0xff]  ;;  %v1628_v27 = vld [vmem:[%s2087_s10 + $0xe0] sm:$0xff] }
 0x302   : >> { %1625 = vst [vmem:[%s2083_s6 + $0xd0] sm:$0xff] %v1624_v28  ;;  %v1630_v32 = vld [vmem:[%s2087_s10 + $0xe8] sm:$0xff]  ;;  %1627 = vst [vmem:[%s2083_s6 + $0xd8] sm:$0xff] %v1626_v31  ;;  %v1632_v33 = vld [vmem:[%s2087_s10 + $0xf0] sm:$0xff] }
 0x303   : >> { %1629 = vst [vmem:[%s2083_s6 + $0xe0] sm:$0xff] %v1628_v27  ;;  %1631 = vst [vmem:[%s2083_s6 + $0xe8] sm:$0xff] %v1630_v32  ;;  %v1634_v34 = vld [vmem:[%s2087_s10 + $0xf8] sm:$0xff]  ;;  %s2840_s10 = smov %s2769_s23 }
 0x304   : >> { %1633 = vst [vmem:[%s2083_s6 + $0xf0] sm:$0xff] %v1632_v33  ;;  %1635 = vst [vmem:[%s2083_s6 + $0xf8] sm:$0xff] %v1634_v34  ;;  %s2839_s6 = smov %s1642_s8 }
 0x305 PF: > { %s2810_s24 = sand.u32 31, %s2846_s26   ;;  %s1849_s25 = sshll.u32 %s2702_s19, 8 }
 0x306   : > { %s1647_s28 = scalar_lea.vmem %s2592_s12, %s1849_s25 [#allocation3]   ;;  %s1649_s30 = scalar_lea.vmem %s2696_s16, %s1849_s25  }
 0x307   : > { %p1843_p13 = scmp.le.s32.totalorder %s2810_s24, 0 }
 0x308   : > { %s2097_s11 = smov (!%p1843_p13), %s1649_s30   ;;  %s2101_s13 = smov (!%p1843_p13), %s1647_s28  }
 0x309   : > { %1740 = sbr.rel (%p1843_p13) target bundleno = 794 (0x31a), region = 143  ;;  %s2105_s14 = smov (!%p1843_p13), 0  }
 0x30a   : > { %s2109_s15 = smov (!%p1843_p13), 0  }
 0x310 LB: >> { %v1659_v29 = vld [vmem:[%s2103_s13] sm:$0xff]  ;;  %s1661_s26 = sadd.s32 1, %s2107_s14  ;;  %s1653_s15 = sadd.s32 1, %s2111_s15   ;;  %s2111_s15 = sphi %s2109_s15, %s1653_s15   ;;  %s2107_s14 = sphi %s2105_s14, %s2106_s14   ;;  %s2103_s13 = sphi %s2101_s13, %s1666_s13   ;;  %s2099_s11 = sphi %s2097_s11, %s1667_s11  }
 0x311   : >> { %1660 = vst [vmem:[%s2099_s11] sm:$0xff] %v1659_v29  ;;  %p1662_p0 = scmp.ge.s32.totalorder %s1661_s26, %s2810_s24  ;;  %p1652_p1 = scmp.ge.s32.totalorder %s1653_s15, %s2810_s24 }
 0x313   : >> { %s2850_s26 = smov (%p1662_p0, %s1661_s26), 0  ;;  %1655 = sbr.rel (!%p1652_p1) target bundleno = 784 (0x310), region = 149 }
 0x314   : >> { %s1844_s12 = sshll.u32 %s2850_s26, 3  ;;  %s2106_s14 = smov %s2850_s26  }
 0x315   : >> { %s1666_s13 = scalar_lea.vmem %s1647_s28, %s1844_s12 [#allocation3]   ;;  %s1667_s11 = scalar_lea.vmem %s1649_s30, %s1844_s12  }
 0x31a PF: > { %p16_p2 = scmp.ge.s32.totalorder %s2172_s29, 5   ;;  %s2842_s26 = smov %s2075_s27 }
 0x31b   : > { %s2843_s27 = smov %s2180_s9  ;;  %s2844_s28 = smov %s2172_s29 }
 0x31c   :  { %18 = sbr.rel (!%p16_p2) target bundleno = 5 (0x5), region = 160 }

</bundles_post_ra>
